<compile_context>
chip_gen: v6e
topology: v6e:2x2x1
jax: 0.10.0
libtpu: 0.0.40
codegen_flags: <defaults>
</compile_context>

<pallas_src>
import functools

import jax
import jax.numpy as jnp
from jax import lax
from jax.experimental import pallas as pl
from jax.experimental.pallas import tpu as pltpu

_LANES = 128   # lane width / padding granularity for hidden dims and batch tile


def _round_up(x, m):
    return ((x + m - 1) // m) * m


def _leaky_relu(x, slope=0.2):
    return jnp.where(x > 0, x, slope * x)


def _mlp_kernel(x_ref, w1_ref, b1_ref, w2_ref, b2_ref, w3_ref, b3_ref,
                w4r_ref, b4_ref, o_ref):
    """x_ref: (bb, IN) f32.  o_ref: (1, 1, bb) lane-dense probabilities.
    Weights/biases are full resident VMEM blocks (already zero-padded);
    b4_ref is a (1, 1) SMEM scalar."""
    f32 = jnp.float32

    x = x_ref[...]                                                     # (bb, IN)
    h = _leaky_relu(jnp.dot(x, w1_ref[...],
                            preferred_element_type=f32) + b1_ref[...])  # (bb, n1p)
    h = _leaky_relu(jnp.dot(h, w2_ref[...],
                            preferred_element_type=f32) + b2_ref[...])  # (bb, n2p)
    h = _leaky_relu(jnp.dot(h, w3_ref[...],
                            preferred_element_type=f32) + b3_ref[...])  # (bb, n3p)

    # Final 1-wide layer: contract hidden dim of (1, n3p) against hidden dim of
    # (bb, n3p) -> lane-dense (1, bb) row.  No h.T materialization.
    logits = lax.dot_general(w4r_ref[...], h,
                             (((1,), (1,)), ((), ())),
                             preferred_element_type=f32) + b4_ref[0, 0]

    # Numerically stable sigmoid: sigmoid(x) = 0.5 * (1 + tanh(x / 2))  (EUP).
    prob = 0.5 * (jnp.tanh(0.5 * logits) + 1.0)

    o_ref[...] = prob.reshape(o_ref.shape).astype(o_ref.dtype)


@functools.partial(jax.jit, static_argnames=("block_b",))
def dnn_target_existence(x, params, block_b=2048):
    """x: (B, input_num) float32.  params: weights stored as (in, out)."""
    f32 = jnp.float32
    x = x.astype(f32)
    B, in_dim = x.shape

    w1, b1 = params["w1"], params["b1"]
    w2, b2 = params["w2"], params["b2"]
    w3, b3 = params["w3"], params["b3"]
    w4, b4 = params["w4"], params["b4"]

    n1p = _round_up(w1.shape[1], _LANES)   # 200 -> 256
    n2p = _round_up(w2.shape[1], _LANES)   # 70  -> 128
    n3p = _round_up(w3.shape[1], _LANES)   # 30  -> 128

    def pad2(a, rows, cols):
        a = a.astype(f32)
        return jnp.pad(a, ((0, rows - a.shape[0]), (0, cols - a.shape[1])))

    w1p = pad2(w1, in_dim, n1p); b1p = pad2(b1, 1, n1p)
    w2p = pad2(w2, n1p, n2p);    b2p = pad2(b2, 1, n2p)
    w3p = pad2(w3, n2p, n3p);    b3p = pad2(b3, 1, n3p)
    w4r = pad2(w4, n3p, 1).T                       # (1, n3p), zero-padded cols
    b4p = b4.astype(f32).reshape(1, 1)             # scalar -> SMEM

    # Batch tiling: one lane-aligned block whenever it fits; large batches split
    # into multiple parallel blocks (sharded across TCs on v7x).
    b_pad_min = _round_up(max(B, 1), _LANES)
    bb = min(_round_up(block_b, _LANES), b_pad_min)
    num_blocks = pl.cdiv(B, bb)
    b_pad = num_blocks * bb
    if b_pad != B:
        x = jnp.pad(x, ((0, b_pad - B), (0, 0)))   # ragged tail: zero rows

    def resident(a):  # full block, constant index map -> stays in VMEM
        return pl.BlockSpec(a.shape, lambda i: (0, 0))

    out3 = pl.pallas_call(
        _mlp_kernel,
        out_shape=jax.ShapeDtypeStruct((num_blocks, 1, bb), f32),
        grid=(num_blocks,),
        in_specs=[
            pl.BlockSpec((bb, in_dim), lambda i: (i, 0)),   # x batch tile
            resident(w1p), resident(b1p),
            resident(w2p), resident(b2p),
            resident(w3p), resident(b3p),
            resident(w4r),
            pl.BlockSpec(memory_space=pltpu.MemorySpace.SMEM),  # b4 scalar
        ],
        out_specs=pl.BlockSpec((1, 1, bb), lambda i: (i, 0, 0)),
        compiler_params=pltpu.CompilerParams(
            dimension_semantics=("parallel",)),
    )(x, w1p, b1p, w2p, b2p, w3p, b3p, w4r, b4p)

    # lane-dense (num_blocks, 1, bb) -> (B, 1), dropping the padded rows.
    return out3.reshape(-1)[:B].reshape(B, 1)


def init_params(key, input_num, num_unit_1=200, num_unit_2=70, num_unit_3=30):
    """torch.nn.Linear-style init U(-1/sqrt(fan_in), 1/sqrt(fan_in)), stored as (in, out)."""
    dims = [(input_num, num_unit_1), (num_unit_1, num_unit_2),
            (num_unit_2, num_unit_3), (num_unit_3, 1)]
    params = {}
    for idx, (fan_in, fan_out) in enumerate(dims, start=1):
        key, kw, kb = jax.random.split(key, 3)
        bound = 1.0 / (fan_in ** 0.5)
        params[f"w{idx}"] = jax.random.uniform(
            kw, (fan_in, fan_out), jnp.float32, -bound, bound)
        params[f"b{idx}"] = jax.random.uniform(
            kb, (1, fan_out), jnp.float32, -bound, bound)
    return params


def reference_forward(x, params):
    h = x
    for idx in range(1, 4):
        h = h @ params[f"w{idx}"] + params[f"b{idx}"]
        h = jnp.where(h > 0, h, 0.2 * h)
    logits = h @ params["w4"] + params["b4"]
    return jax.nn.sigmoid(logits)


if __name__ == "__main__":
    key = jax.random.PRNGKey(0)
    k_params, k_x1, k_x2 = jax.random.split(key, 3)

    input_num = 32
    params = init_params(k_params, input_num)

    # Case 1: ragged batch (300 rows -> one padded 384-row block).
    x1 = jax.random.normal(k_x1, (300, input_num), jnp.float32)
    out1 = jax.block_until_ready(dnn_target_existence(x1, params))
    ref1 = reference_forward(x1, params)
    assert out1.shape == (300, 1)
    assert jnp.allclose(out1, ref1, atol=2e-3, rtol=2e-3), "mismatch vs reference (B=300)"

    # Case 2: tiny batch (single 128-row padded block).
    x2 = jax.random.normal(k_x2, (8, input_num), jnp.float32)
    out2 = jax.block_until_ready(dnn_target_existence(x2, params))
    ref2 = reference_forward(x2, params)
    assert out2.shape == (8, 1)
    assert jnp.allclose(out2, ref2, atol=2e-3, rtol=2e-3), "mismatch vs reference (B=8)"

    print("KERNEL_OK")
</pallas_src>

<mosaic_0001>
module attributes {stable_mosaic.version = 11 : i64} {
  func.func @_mlp_kernel(%arg0: i32, %arg1: memref<384x32xf32, #tpu.memory_space<vmem>>, %arg2: memref<32x256xf32, #tpu.memory_space<vmem>>, %arg3: memref<1x256xf32, #tpu.memory_space<vmem>>, %arg4: memref<256x128xf32, #tpu.memory_space<vmem>>, %arg5: memref<1x128xf32, #tpu.memory_space<vmem>>, %arg6: memref<128x128xf32, #tpu.memory_space<vmem>>, %arg7: memref<1x128xf32, #tpu.memory_space<vmem>>, %arg8: memref<1x128xf32, #tpu.memory_space<vmem>>, %arg9: memref<1x1xf32, #tpu.memory_space<smem>>, %arg10: memref<1x1x384xf32, #tpu.memory_space<vmem>>) attributes {dimension_semantics = [#tpu.dimension_semantics<parallel>], iteration_bounds = array<i64: 1>, scalar_prefetch = 0 : i64, scratch_operands = 0 : i64, tpu.core_type = #tpu.core_type<tc>, window_params = [{transform_indices = @transform_0, window_bounds = array<i64: 384, 32>}, {pipeline_mode = #tpu.pipeline_mode<synchronous>, transform_indices = @transform_1, window_bounds = array<i64: 32, 256>}, {pipeline_mode = #tpu.pipeline_mode<synchronous>, transform_indices = @transform_2, window_bounds = array<i64: 1, 256>}, {pipeline_mode = #tpu.pipeline_mode<synchronous>, transform_indices = @transform_3, window_bounds = array<i64: 256, 128>}, {pipeline_mode = #tpu.pipeline_mode<synchronous>, transform_indices = @transform_4, window_bounds = array<i64: 1, 128>}, {pipeline_mode = #tpu.pipeline_mode<synchronous>, transform_indices = @transform_5, window_bounds = array<i64: 128, 128>}, {pipeline_mode = #tpu.pipeline_mode<synchronous>, transform_indices = @transform_6, window_bounds = array<i64: 1, 128>}, {pipeline_mode = #tpu.pipeline_mode<synchronous>, transform_indices = @transform_7, window_bounds = array<i64: 1, 128>}, {transform_indices = @transform_8, window_bounds = array<i64: 1, 1>}, {transform_indices = @transform_9, window_bounds = array<i64: 1, 1, 384>}]} {
    %c0 = arith.constant 0 : index
    %c0_0 = arith.constant 0 : index
    %0 = vector.load %arg1[%c0, %c0_0] : memref<384x32xf32, #tpu.memory_space<vmem>>, vector<384x32xf32>
    %c0_1 = arith.constant 0 : index
    %c0_2 = arith.constant 0 : index
    %1 = vector.load %arg2[%c0_1, %c0_2] : memref<32x256xf32, #tpu.memory_space<vmem>>, vector<32x256xf32>
    %cst = arith.constant dense<0.000000e+00> : vector<384x256xf32>
    %2 = tpu.matmul %0, %1, %cst {dimension_numbers = #tpu.dot_dimension_numbers<[1], [0], [0], [1], [0, 0, 1, 1], [], []>} : vector<384x32xf32>, vector<32x256xf32>, vector<384x256xf32> -> vector<384x256xf32>
    %c0_3 = arith.constant 0 : index
    %c0_4 = arith.constant 0 : index
    %3 = vector.load %arg3[%c0_3, %c0_4] : memref<1x256xf32, #tpu.memory_space<vmem>>, vector<1x256xf32>
    %4 = vector.broadcast %3 : vector<1x256xf32> to vector<384x256xf32>
    %5 = arith.addf %2, %4 : vector<384x256xf32>
    %cst_5 = arith.constant 0.000000e+00 : f32
    %6 = vector.broadcast %cst_5 : f32 to vector<384x256xf32>
    %7 = arith.cmpf ogt, %5, %6 : vector<384x256xf32>
    %cst_6 = arith.constant 2.000000e-01 : f32
    %8 = vector.broadcast %cst_6 : f32 to vector<384x256xf32>
    %9 = arith.mulf %8, %5 : vector<384x256xf32>
    %10 = arith.select %7, %5, %9 : vector<384x256xi1>, vector<384x256xf32>
    %c0_7 = arith.constant 0 : index
    %c0_8 = arith.constant 0 : index
    %11 = vector.load %arg4[%c0_7, %c0_8] : memref<256x128xf32, #tpu.memory_space<vmem>>, vector<256x128xf32>
    %cst_9 = arith.constant dense<0.000000e+00> : vector<384x128xf32>
    %12 = tpu.matmul %10, %11, %cst_9 {dimension_numbers = #tpu.dot_dimension_numbers<[1], [0], [0], [1], [0, 0, 1, 1], [], []>} : vector<384x256xf32>, vector<256x128xf32>, vector<384x128xf32> -> vector<384x128xf32>
    %c0_10 = arith.constant 0 : index
    %c0_11 = arith.constant 0 : index
    %13 = vector.load %arg5[%c0_10, %c0_11] : memref<1x128xf32, #tpu.memory_space<vmem>>, vector<1x128xf32>
    %14 = vector.broadcast %13 : vector<1x128xf32> to vector<384x128xf32>
    %15 = arith.addf %12, %14 : vector<384x128xf32>
    %cst_12 = arith.constant 0.000000e+00 : f32
    %16 = vector.broadcast %cst_12 : f32 to vector<384x128xf32>
    %17 = arith.cmpf ogt, %15, %16 : vector<384x128xf32>
    %cst_13 = arith.constant 2.000000e-01 : f32
    %18 = vector.broadcast %cst_13 : f32 to vector<384x128xf32>
    %19 = arith.mulf %18, %15 : vector<384x128xf32>
    %20 = arith.select %17, %15, %19 : vector<384x128xi1>, vector<384x128xf32>
    %c0_14 = arith.constant 0 : index
    %c0_15 = arith.constant 0 : index
    %21 = vector.load %arg6[%c0_14, %c0_15] : memref<128x128xf32, #tpu.memory_space<vmem>>, vector<128x128xf32>
    %cst_16 = arith.constant dense<0.000000e+00> : vector<384x128xf32>
    %22 = tpu.matmul %20, %21, %cst_16 {dimension_numbers = #tpu.dot_dimension_numbers<[1], [0], [0], [1], [0, 0, 1, 1], [], []>} : vector<384x128xf32>, vector<128x128xf32>, vector<384x128xf32> -> vector<384x128xf32>
    %c0_17 = arith.constant 0 : index
    %c0_18 = arith.constant 0 : index
    %23 = vector.load %arg7[%c0_17, %c0_18] : memref<1x128xf32, #tpu.memory_space<vmem>>, vector<1x128xf32>
    %24 = vector.broadcast %23 : vector<1x128xf32> to vector<384x128xf32>
    %25 = arith.addf %22, %24 : vector<384x128xf32>
    %cst_19 = arith.constant 0.000000e+00 : f32
    %26 = vector.broadcast %cst_19 : f32 to vector<384x128xf32>
    %27 = arith.cmpf ogt, %25, %26 : vector<384x128xf32>
    %cst_20 = arith.constant 2.000000e-01 : f32
    %28 = vector.broadcast %cst_20 : f32 to vector<384x128xf32>
    %29 = arith.mulf %28, %25 : vector<384x128xf32>
    %30 = arith.select %27, %25, %29 : vector<384x128xi1>, vector<384x128xf32>
    %c0_21 = arith.constant 0 : index
    %c0_22 = arith.constant 0 : index
    %31 = vector.load %arg8[%c0_21, %c0_22] : memref<1x128xf32, #tpu.memory_space<vmem>>, vector<1x128xf32>
    %cst_23 = arith.constant dense<0.000000e+00> : vector<1x384xf32>
    %32 = tpu.matmul %31, %30, %cst_23 {dimension_numbers = #tpu.dot_dimension_numbers<[1], [1], [0], [0], [0, 0, 1, 0], [], []>} : vector<1x128xf32>, vector<384x128xf32>, vector<1x384xf32> -> vector<1x384xf32>
    %c0_24 = arith.constant 0 : index
    %c0_25 = arith.constant 0 : index
    %33 = memref.load %arg9[%c0_24, %c0_25] : memref<1x1xf32, #tpu.memory_space<smem>>
    %34 = vector.broadcast %33 : f32 to vector<1x384xf32>
    %35 = arith.addf %32, %34 : vector<1x384xf32>
    %cst_26 = arith.constant 5.000000e-01 : f32
    %36 = vector.broadcast %cst_26 : f32 to vector<1x384xf32>
    %37 = arith.mulf %36, %35 : vector<1x384xf32>
    %38 = math.tanh %37 : vector<1x384xf32>
    %cst_27 = arith.constant 1.000000e+00 : f32
    %39 = vector.broadcast %cst_27 : f32 to vector<1x384xf32>
    %40 = arith.addf %38, %39 : vector<1x384xf32>
    %cst_28 = arith.constant 5.000000e-01 : f32
    %41 = vector.broadcast %cst_28 : f32 to vector<1x384xf32>
    %42 = arith.mulf %41, %40 : vector<1x384xf32>
    %43 = vector.shape_cast %42 : vector<1x384xf32> to vector<1x1x384xf32>
    %c0_29 = arith.constant 0 : index
    %c0_30 = arith.constant 0 : index
    %c0_31 = arith.constant 0 : index
    %44 = vector.load %arg10[%c0_29, %c0_30, %c0_31] : memref<1x1x384xf32, #tpu.memory_space<vmem>>, vector<1x1x384xf32>
    tpu.vector_store %arg10[%c0_29, %c0_30, %c0_31], %43 {strides = array<i32>} : memref<1x1x384xf32, #tpu.memory_space<vmem>>, vector<1x1x384xf32>,
    return
  }
  func.func @transform_0(%arg0: i32) -> (i32, i32) {
    %c0_i32 = arith.constant 0 : i32
    %c0_i32_0 = arith.constant 0 : i32
    return %arg0, %c0_i32 : i32, i32
  }
  func.func @transform_1(%arg0: i32) -> (i32, i32) {
    %c0_i32 = arith.constant 0 : i32
    %c0_i32_0 = arith.constant 0 : i32
    %c0_i32_1 = arith.constant 0 : i32
    return %c0_i32, %c0_i32_0 : i32, i32
  }
  func.func @transform_2(%arg0: i32) -> (i32, i32) {
    %c0_i32 = arith.constant 0 : i32
    %c0_i32_0 = arith.constant 0 : i32
    %c0_i32_1 = arith.constant 0 : i32
    return %c0_i32, %c0_i32_0 : i32, i32
  }
  func.func @transform_3(%arg0: i32) -> (i32, i32) {
    %c0_i32 = arith.constant 0 : i32
    %c0_i32_0 = arith.constant 0 : i32
    %c0_i32_1 = arith.constant 0 : i32
    return %c0_i32, %c0_i32_0 : i32, i32
  }
  func.func @transform_4(%arg0: i32) -> (i32, i32) {
    %c0_i32 = arith.constant 0 : i32
    %c0_i32_0 = arith.constant 0 : i32
    %c0_i32_1 = arith.constant 0 : i32
    return %c0_i32, %c0_i32_0 : i32, i32
  }
  func.func @transform_5(%arg0: i32) -> (i32, i32) {
    %c0_i32 = arith.constant 0 : i32
    %c0_i32_0 = arith.constant 0 : i32
    %c0_i32_1 = arith.constant 0 : i32
    return %c0_i32, %c0_i32_0 : i32, i32
  }
  func.func @transform_6(%arg0: i32) -> (i32, i32) {
    %c0_i32 = arith.constant 0 : i32
    %c0_i32_0 = arith.constant 0 : i32
    %c0_i32_1 = arith.constant 0 : i32
    return %c0_i32, %c0_i32_0 : i32, i32
  }
  func.func @transform_7(%arg0: i32) -> (i32, i32) {
    %c0_i32 = arith.constant 0 : i32
    %c0_i32_0 = arith.constant 0 : i32
    %c0_i32_1 = arith.constant 0 : i32
    return %c0_i32, %c0_i32_0 : i32, i32
  }
  func.func @transform_8(%arg0: i32) -> (i32, i32) {
    %c0_i32 = arith.constant 0 : i32
    %c0_i32_0 = arith.constant 0 : i32
    %c0_i32_1 = arith.constant 0 : i32
    return %c0_i32, %c0_i32_0 : i32, i32
  }
  func.func @transform_9(%arg0: i32) -> (i32, i32, i32) {
    %c0_i32 = arith.constant 0 : i32
    %c0_i32_0 = arith.constant 0 : i32
    %c0_i32_1 = arith.constant 0 : i32
    return %arg0, %c0_i32, %c0_i32_0 : i32, i32, i32
  }
}

</mosaic_0001>

<bundles_post_ra>
// kernel: dnn_target_existence.1
= control target key start
LH: loop header
LB: loop body
LE: loop exit
PB: predicated region body
PF: predicated region fallthrough
CT: control target
= control target key end

     0   :  { %v2352_v3 = vmov 0.0   ;;  %vm101_vm0 = vcmask 261120   ;;  %s3183_s1 = inlined_call_operand.vmem [shape: f32[32,256], index: 1, kind: input, shape index: {}]   ;;  %s3184_s0 = inlined_call_operand.vmem [shape: f32[384,32], index: 0, kind: input, shape index: {}]   ;;  %s3185_s3 = inlined_call_operand.vmem [shape: f32[256,128], index: 3, kind: input, shape index: {}]   ;;  %s3186_s2 = inlined_call_operand.vmem [shape: f32[1,256], index: 2, kind: input, shape index: {}]   ;;  %s3187_s5 = inlined_call_operand.vmem [shape: f32[128,128], index: 5, kind: input, shape index: {}]   ;;  %s3188_s4 = inlined_call_operand.vmem [shape: f32[1,128], index: 4, kind: input, shape index: {}]   ;;  %s3189_s6 = inlined_call_operand.vmem [shape: f32[1,128], index: 6, kind: input, shape index: {}]   ;;  %s3190_s7 = inlined_call_operand.vmem [shape: f32[1,128], index: 7, kind: input, shape index: {}]   ;;  %s3191_s8 = inlined_call_operand.<no memory space> [shape: f32[1,1], index: 8, kind: input, shape index: {}]   ;;  %s3192_s9 = inlined_call_operand.vmem [shape: f32[1,1,384], index: 9, kind: output, shape index: {}]  }
   0x1   :  { %v88_v0 = vld [vmem:[%s3183_s1 + $0x38] sm:$0xff]  ;;  %v87_v1 = vld [vmem:[%s3183_s1 + $0x30] sm:$0xff]  ;;  %v86_v2 = vld [vmem:[%s3183_s1 + $0x28] sm:$0xff]  ;;  %310 = vmatprep.mubr.f32.mxu0 %v2352_v3  ;;  %926 = vmatprep.subr.mxu1 %v2352_v3 }
   0x2   :  { %270 = vmatprep.subr.mxu0 %v88_v0  ;;  %v85_v4 = vld [vmem:[%s3183_s1 + $0x20] sm:$0xff]  ;;  %v84_v5 = vld [vmem:[%s3183_s1 + $0x18] sm:$0xff]  ;;  %v83_v6 = vld [vmem:[%s3183_s1 + $0x10] sm:$0xff] }
   0x3   :  { %271 = vmatpush1.msra.mxu0 %v87_v1  ;;  %v82_v7 = vld [vmem:[%s3183_s1 + $0x8] sm:$0xff]  ;;  %v81_v8 = vld [vmem:[%s3183_s1] sm:$0xff]  ;;  %v35_v11 = vld [vmem:[%s3184_s0 + $0x10] sm:$0xff] }
   0x4   :  { %272 = vmatprep.subr.mxu0 %v86_v2  ;;  %v33_v9 = vld [vmem:[%s3184_s0] sm:$0xff]  ;;  %v34_v10 = vld [vmem:[%s3184_s0 + $0x8] sm:$0xff]  ;;  %v36_v12 = vld [vmem:[%s3184_s0 + $0x18] sm:$0xff] }
   0x5   :  { %273 = vmatpush1.msra.mxu0 %v85_v4  ;;  %v902_v13 = vld [vmem:[%s3185_s3 + $0x78] sm:$0xff]  ;;  %v901_v14 = vld [vmem:[%s3185_s3 + $0x70] sm:$0xff]  ;;  %v900_v15 = vld [vmem:[%s3185_s3 + $0x68] sm:$0xff] }
   0x6   :  { %274 = vmatprep.subr.mxu0 %v84_v5  ;;  %927 = vmatpush1.msra.mxu1 %v902_v13  ;;  %v37_v16 = vld [vmem:[%s3184_s0 + $0x20] sm:$0xff]  ;;  %v898_v18 = vld [vmem:[%s3185_s3 + $0x58] sm:$0xff]  ;;  %v38_v19 = vld [vmem:[%s3184_s0 + $0x28] sm:$0xff] }
   0x7   :  { %275 = vmatpush1.msra.mxu0 %v83_v6  ;;  %928 = vmatprep.subr.mxu1 %v2352_v3  ;;  %v899_v17 = vld [vmem:[%s3185_s3 + $0x60] sm:$0xff]  ;;  %v897_v20 = vld [vmem:[%s3185_s3 + $0x50] sm:$0xff]  ;;  %v896_v21 = vld [vmem:[%s3185_s3 + $0x48] sm:$0xff] }
   0x8   :  { %276 = vmatprep.subr.mxu0 %v82_v7  ;;  %929 = vmatpush1.msra.mxu1 %v901_v14  ;;  %v39_v22 = vld [vmem:[%s3184_s0 + $0x30] sm:$0xff]  ;;  %v895_v23 = vld [vmem:[%s3185_s3 + $0x40] sm:$0xff]  ;;  %v894_v24 = vld [vmem:[%s3185_s3 + $0x38] sm:$0xff] }
   0x9   :  { %277 = vmatpush1.msra.mxu0 %v81_v8  ;;  %930 = vmatprep.subr.mxu1 %v2352_v3  ;;  %v40_v25 = vld [vmem:[%s3184_s0 + $0x38] sm:$0xff]  ;;  %v893_v26 = vld [vmem:[%s3185_s3 + $0x30] sm:$0xff]  ;;  %v892_v27 = vld [vmem:[%s3185_s3 + $0x28] sm:$0xff] }
   0xa   :  { %2039 = vmatmul.mubr.msk.f32.vlgmr.msra.gmra.mxu0 %vm101_vm0, %v33_v9  ;;  %931 = vmatpush1.msra.mxu1 %v900_v15  ;;  %v41_v28 = vld [vmem:[%s3184_s0 + $0x40] sm:$0xff]  ;;  %v890_v30 = vld [vmem:[%s3185_s3 + $0x18] sm:$0xff]  ;;  %v42_v31 = vld [vmem:[%s3184_s0 + $0x48] sm:$0xff] }
   0xb   :  { %316 = vmatprep.mubr.f32.mxu0 %v2352_v3  ;;  %932 = vmatprep.subr.mxu1 %v2352_v3  ;;  %v891_v29 = vld [vmem:[%s3185_s3 + $0x20] sm:$0xff]  ;;  %v889_v32 = vld [vmem:[%s3185_s3 + $0x10] sm:$0xff]  ;;  %v888_v33 = vld [vmem:[%s3185_s3 + $0x8] sm:$0xff] }
   0xc   :  { %933 = vmatpush1.msra.mxu1 %v899_v17  ;;  %v43_v34 = vld [vmem:[%s3184_s0 + $0x50] sm:$0xff]  ;;  %v887_v35 = vld [vmem:[%s3185_s3] sm:$0xff]  ;;  %v918_v36 = vld [vmem:[%s3185_s3 + $0xf8] sm:$0xff] }
   0xd   :  { %934 = vmatprep.subr.mxu1 %v2352_v3  ;;  %v44_v37 = vld [vmem:[%s3184_s0 + $0x58] sm:$0xff]  ;;  %v917_v38 = vld [vmem:[%s3185_s3 + $0xf0] sm:$0xff]  ;;  %v916_v39 = vld [vmem:[%s3185_s3 + $0xe8] sm:$0xff] }
   0xe   :  { %2040 = vmatmul.mubr.msk.f32.gmra.mxu0 %vm101_vm0, %v34_v10  ;;  %935 = vmatpush1.msra.mxu1 %v898_v18  ;;  %v45_v40 = vld [vmem:[%s3184_s0 + $0x60] sm:$0xff]  ;;  %v914_v42 = vld [vmem:[%s3185_s3 + $0xd8] sm:$0xff]  ;;  %v46_v43 = vld [vmem:[%s3184_s0 + $0x68] sm:$0xff] }
   0xf   :  { %322 = vmatprep.mubr.f32.mxu0 %v2352_v3  ;;  %936 = vmatprep.subr.mxu1 %v2352_v3  ;;  %v915_v41 = vld [vmem:[%s3185_s3 + $0xe0] sm:$0xff]  ;;  %v913_v44 = vld [vmem:[%s3185_s3 + $0xd0] sm:$0xff]  ;;  %v912_v45 = vld [vmem:[%s3185_s3 + $0xc8] sm:$0xff] }
  0x10   :  { %937 = vmatpush1.msra.mxu1 %v897_v20  ;;  %v47_v46 = vld [vmem:[%s3184_s0 + $0x70] sm:$0xff]  ;;  %v911_v47 = vld [vmem:[%s3185_s3 + $0xc0] sm:$0xff]  ;;  %v910_v48 = vld [vmem:[%s3185_s3 + $0xb8] sm:$0xff] }
  0x11   :  { %938 = vmatprep.subr.mxu1 %v2352_v3  ;;  %v48_v49 = vld [vmem:[%s3184_s0 + $0x78] sm:$0xff]  ;;  %v909_v50 = vld [vmem:[%s3185_s3 + $0xb0] sm:$0xff]  ;;  %v908_v51 = vld [vmem:[%s3185_s3 + $0xa8] sm:$0xff] }
  0x12   :  { %2041 = vmatmul.mubr.msk.f32.gmra.mxu0 %vm101_vm0, %v35_v11  ;;  %939 = vmatpush1.msra.mxu1 %v896_v21  ;;  %v49_v52 = vld [vmem:[%s3184_s0 + $0x80] sm:$0xff]  ;;  %v50_v54 = vld [vmem:[%s3184_s0 + $0x88] sm:$0xff]  ;;  %v906_v55 = vld [vmem:[%s3185_s3 + $0x98] sm:$0xff] }
  0x13   :  { %328 = vmatprep.mubr.f32.mxu0 %v2352_v3  ;;  %940 = vmatprep.subr.mxu1 %v2352_v3  ;;  %v907_v53 = vld [vmem:[%s3185_s3 + $0xa0] sm:$0xff]  ;;  %v905_v56 = vld [vmem:[%s3185_s3 + $0x90] sm:$0xff]  ;;  %v904_v58 = vld [vmem:[%s3185_s3 + $0x88] sm:$0xff] }
  0x14   :  { %941 = vmatpush1.msra.mxu1 %v895_v23  ;;  %v51_v57 = vld [vmem:[%s3184_s0 + $0x90] sm:$0xff]  ;;  %v903_v59 = vld [vmem:[%s3185_s3 + $0x80] sm:$0xff]  ;;  %v52_v60 = vld [vmem:[%s3184_s0 + $0x98] sm:$0xff] }
  0x15   :  { %942 = vmatprep.subr.mxu1 %v2352_v3  ;;  %v53_v61 = vld [vmem:[%s3184_s0 + $0xa0] sm:$0xff]  ;;  %v54_v62 = vld [vmem:[%s3184_s0 + $0xa8] sm:$0xff]  ;;  %v55_v63 = vld [vmem:[%s3184_s0 + $0xb0] sm:$0xff] }
  0x16   :  { %2042 = vmatmul.mubr.msk.f32.gmra.mxu0 %vm101_vm0, %v36_v12  ;;  %943 = vmatpush1.msra.mxu1 %v894_v24  ;;  %v56_v0 = vld [vmem:[%s3184_s0 + $0xb8] sm:$0xff]  ;;  %v57_v1 = vld [vmem:[%s3184_s0 + $0xc0] sm:$0xff]  ;;  %v58_v2 = vld [vmem:[%s3184_s0 + $0xc8] sm:$0xff]  ;;  %v91_v24 = vlaneseq }
  0x17   :  { %334 = vmatprep.mubr.f32.mxu0 %v2352_v3  ;;  %944 = vmatprep.subr.mxu1 %v2352_v3  ;;  %v59_v4 = vld [vmem:[%s3184_s0 + $0xd0] sm:$0xff]  ;;  %v60_v5 = vld [vmem:[%s3184_s0 + $0xd8] sm:$0xff]  ;;  %v61_v6 = vld [vmem:[%s3184_s0 + $0xe0] sm:$0xff] }
  0x18   :  { %945 = vmatpush1.msra.mxu1 %v893_v26  ;;  %v62_v7 = vld [vmem:[%s3184_s0 + $0xe8] sm:$0xff]  ;;  %v63_v8 = vld [vmem:[%s3184_s0 + $0xf0] sm:$0xff]  ;;  %v64_v9 = vld [vmem:[%s3184_s0 + $0xf8] sm:$0xff]  ;;  %v2792_v26 = vshrl.u32 %v91_v24, 7 }
  0x19   :  { %946 = vmatprep.subr.mxu1 %v2352_v3  ;;  %v65_v10 = vld [vmem:[%s3184_s0 + $0x100] sm:$0xff]  ;;  %v66_v11 = vld [vmem:[%s3184_s0 + $0x108] sm:$0xff]  ;;  %v67_v12 = vld [vmem:[%s3184_s0 + $0x110] sm:$0xff] }
  0x1a   :  { %2043 = vmatmul.mubr.msk.f32.gmra.mxu0 %vm101_vm0, %v37_v16  ;;  %947 = vmatpush1.msra.mxu1 %v892_v27  ;;  %v68_v13 = vld [vmem:[%s3184_s0 + $0x118] sm:$0xff]  ;;  %v69_v14 = vld [vmem:[%s3184_s0 + $0x120] sm:$0xff]  ;;  %v70_v15 = vld [vmem:[%s3184_s0 + $0x128] sm:$0xff] }
  0x1b   :  { %340 = vmatprep.mubr.f32.mxu0 %v2352_v3  ;;  %948 = vmatprep.subr.mxu1 %v2352_v3  ;;  %v71_v16 = vld [vmem:[%s3184_s0 + $0x130] sm:$0xff]  ;;  %v72_v17 = vld [vmem:[%s3184_s0 + $0x138] sm:$0xff]  ;;  %v73_v18 = vld [vmem:[%s3184_s0 + $0x140] sm:$0xff] }
  0x1c   :  { %949 = vmatpush1.msra.mxu1 %v891_v29  ;;  %v75_v20 = vld [vmem:[%s3184_s0 + $0x150] sm:$0xff]  ;;  %v76_v21 = vld [vmem:[%s3184_s0 + $0x158] sm:$0xff]  ;;  %v78_v23 = vld [vmem:[%s3184_s0 + $0x168] sm:$0xff] }
  0x1d   :  { %950 = vmatprep.subr.mxu1 %v2352_v3  ;;  %v80_v27 = vld [vmem:[%s3184_s0 + $0x178] sm:$0xff]  ;;  %v89_v29 = vld [vmem:[%s3186_s2] sm:$0x3] }
  0x1e   :  { %2044 = vmatmul.mubr.msk.f32.gmra.mxu0 %vm101_vm0, %v38_v19  ;;  %951 = vmatpush1.msra.mxu1 %v890_v30  ;;  %v74_v19 = vld [vmem:[%s3184_s0 + $0x148] sm:$0xff]  ;;  %v97_v30 = vsub.s32 1, %v2792_v26 }
  0x1f   :  { %346 = vmatprep.mubr.f32.mxu0 %v2352_v3  ;;  %952 = vmatprep.subr.mxu1 %v2352_v3 }
  0x20   :  { %953 = vmatpush1.msra.mxu1 %v889_v32  ;;  %v2807_v32 = vrot.slane %v89_v29, %v97_v30 }
  0x21   :  { %954 = vmatprep.subr.mxu1 %v2352_v3 }
  0x22   :  { %2045 = vmatmul.mubr.msk.f32.gmra.mxu0 %vm101_vm0, %v39_v22  ;;  %955 = vmatpush1.msra.mxu1 %v888_v33  ;;  %v77_v22 = vld [vmem:[%s3184_s0 + $0x160] sm:$0xff] }
  0x23   :  { %352 = vmatprep.mubr.f32.mxu0 %v2352_v3  ;;  %956 = vmatprep.subr.mxu1 %v2352_v3 }
  0x24   :  { %957 = vmatpush1.msra.mxu1 %v887_v35 }
  0x25   :  { %958 = vmatprep.subr.mxu1 %v2352_v3 }
  0x26   :  { %2046 = vmatmul.mubr.msk.f32.gmra.mxu0 %vm101_vm0, %v40_v25  ;;  %959 = vmatpush2.msra.mxu1 %v918_v36  ;;  %v79_v25 = vld [vmem:[%s3184_s0 + $0x170] sm:$0xff] }
  0x27   :  { %358 = vmatprep.mubr.f32.mxu0 %v2352_v3  ;;  %960 = vmatprep.subr.mxu1 %v2352_v3 }
  0x28   :  { %961 = vmatpush2.msra.mxu1 %v917_v38 }
  0x29   :  { %962 = vmatprep.subr.mxu1 %v2352_v3 }
  0x2a   :  { %2047 = vmatmul.mubr.msk.f32.gmra.mxu0 %vm101_vm0, %v41_v28  ;;  %963 = vmatpush2.msra.mxu1 %v916_v39  ;;  %v93_v28 = vsub.s32 0, %v2792_v26 }
  0x2b   :  { %364 = vmatprep.mubr.f32.mxu0 %v2352_v3  ;;  %964 = vmatprep.subr.mxu1 %v2352_v3 }
  0x2c   :  { %965 = vmatpush2.msra.mxu1 %v915_v41 }
  0x2d   :  { %966 = vmatprep.subr.mxu1 %v2352_v3 }
  0x2e   :  { %2048 = vmatmul.mubr.msk.f32.gmra.mxu0 %vm101_vm0, %v42_v31  ;;  %967 = vmatpush2.msra.mxu1 %v914_v42  ;;  %v2805_v31 = vrot.slane %v89_v29, %v93_v28 }
  0x2f   :  { %370 = vmatprep.mubr.f32.mxu0 %v2352_v3  ;;  %968 = vmatprep.subr.mxu1 %v2352_v3 }
  0x30   :  { %969 = vmatpush2.msra.mxu1 %v913_v44 }
  0x31   :  { %970 = vmatprep.subr.mxu1 %v2352_v3 }
  0x32   :  { %2049 = vmatmul.mubr.msk.f32.gmra.mxu0 %vm101_vm0, %v43_v34  ;;  %971 = vmatpush2.msra.mxu1 %v912_v45 }
  0x33   :  { %376 = vmatprep.mubr.f32.mxu0 %v2352_v3  ;;  %972 = vmatprep.subr.mxu1 %v2352_v3 }
  0x34   :  { %973 = vmatpush2.msra.mxu1 %v911_v47 }
  0x35   :  { %974 = vmatprep.subr.mxu1 %v2352_v3 }
  0x36   :  { %2050 = vmatmul.mubr.msk.f32.gmra.mxu0 %vm101_vm0, %v44_v37  ;;  %975 = vmatpush2.msra.mxu1 %v910_v48 }
  0x37   :  { %382 = vmatprep.mubr.f32.mxu0 %v2352_v3  ;;  %976 = vmatprep.subr.mxu1 %v2352_v3 }
  0x38   :  { %977 = vmatpush2.msra.mxu1 %v909_v50 }
  0x39   :  { %978 = vmatprep.subr.mxu1 %v2352_v3 }
  0x3a   :  { %2051 = vmatmul.mubr.msk.f32.gmra.mxu0 %vm101_vm0, %v45_v40  ;;  %979 = vmatpush2.msra.mxu1 %v908_v51 }
  0x3b   :  { %388 = vmatprep.mubr.f32.mxu0 %v2352_v3  ;;  %980 = vmatprep.subr.mxu1 %v2352_v3 }
  0x3c   :  { %981 = vmatpush2.msra.mxu1 %v907_v53 }
  0x3d   :  { %982 = vmatprep.subr.mxu1 %v2352_v3 }
  0x3e   :  { %2052 = vmatmul.mubr.msk.f32.gmra.mxu0 %vm101_vm0, %v46_v43  ;;  %983 = vmatpush2.msra.mxu1 %v906_v55 }
  0x3f   :  { %394 = vmatprep.mubr.f32.mxu0 %v2352_v3  ;;  %984 = vmatprep.subr.mxu1 %v2352_v3 }
  0x40   :  { %985 = vmatpush2.msra.mxu1 %v905_v56 }
  0x41   :  { %986 = vmatprep.subr.mxu1 %v2352_v3 }
  0x42   :  { %2053 = vmatmul.mubr.msk.f32.gmra.mxu0 %vm101_vm0, %v47_v46  ;;  %987 = vmatpush2.msra.mxu1 %v904_v58 }
  0x43   :  { %400 = vmatprep.mubr.f32.mxu0 %v2352_v3  ;;  %988 = vmatprep.subr.mxu1 %v2352_v3 }
  0x44   :  { %989 = vmatpush2.msra.mxu1 %v903_v59 }
  0x46   :  { %2054 = vmatmul.mubr.msk.f32.gmra.mxu0 %vm101_vm0, %v48_v49 }
  0x47   :  { %406 = vmatprep.mubr.f32.mxu0 %v2352_v3 }
  0x4a   :  { %2055 = vmatmul.mubr.msk.f32.gmra.mxu0 %vm101_vm0, %v49_v52 }
  0x4b   :  { %412 = vmatprep.mubr.f32.mxu0 %v2352_v3 }
  0x4e   :  { %2056 = vmatmul.mubr.msk.f32.gmra.mxu0 %vm101_vm0, %v50_v54 }
  0x4f   :  { %418 = vmatprep.mubr.f32.mxu0 %v2352_v3 }
  0x52   :  { %2057 = vmatmul.mubr.msk.f32.gmra.mxu0 %vm101_vm0, %v51_v57 }
  0x53   :  { %424 = vmatprep.mubr.f32.mxu0 %v2352_v3 }
  0x56   :  { %2058 = vmatmul.mubr.msk.f32.gmra.mxu0 %vm101_vm0, %v52_v60 }
  0x57   :  { %430 = vmatprep.mubr.f32.mxu0 %v2352_v3 }
  0x5a   :  { %2059 = vmatmul.mubr.msk.f32.gmra.mxu0 %vm101_vm0, %v53_v61 }
  0x5b   :  { %436 = vmatprep.mubr.f32.mxu0 %v2352_v3 }
  0x5e   :  { %2060 = vmatmul.mubr.msk.f32.gmra.mxu0 %vm101_vm0, %v54_v62 }
  0x5f   :  { %442 = vmatprep.mubr.f32.mxu0 %v2352_v3 }
  0x62   :  { %2061 = vmatmul.mubr.msk.f32.gmra.mxu0 %vm101_vm0, %v55_v63 }
  0x63   :  { %448 = vmatprep.mubr.f32.mxu0 %v2352_v3 }
  0x66   :  { %2062 = vmatmul.mubr.msk.f32.gmra.mxu0 %vm101_vm0, %v56_v0 }
  0x67   :  { %454 = vmatprep.mubr.f32.mxu0 %v2352_v3 }
  0x6a   :  { %2063 = vmatmul.mubr.msk.f32.gmra.mxu0 %vm101_vm0, %v57_v1 }
  0x6b   :  { %460 = vmatprep.mubr.f32.mxu0 %v2352_v3 }
  0x6e   :  { %2064 = vmatmul.mubr.msk.f32.gmra.mxu0 %vm101_vm0, %v58_v2 }
  0x6f   :  { %466 = vmatprep.mubr.f32.mxu0 %v2352_v3 }
  0x72   :  { %2065 = vmatmul.mubr.msk.f32.gmra.mxu0 %vm101_vm0, %v59_v4 }
  0x73   :  { %472 = vmatprep.mubr.f32.mxu0 %v2352_v3 }
  0x76   :  { %2066 = vmatmul.mubr.msk.f32.gmra.mxu0 %vm101_vm0, %v60_v5 }
  0x77   :  { %478 = vmatprep.mubr.f32.mxu0 %v2352_v3 }
  0x7a   :  { %2067 = vmatmul.mubr.msk.f32.gmra.mxu0 %vm101_vm0, %v61_v6 }
  0x7b   :  { %484 = vmatprep.mubr.f32.mxu0 %v2352_v3 }
  0x7e   :  { %2068 = vmatmul.mubr.msk.f32.gmra.mxu0 %vm101_vm0, %v62_v7 }
  0x7f   :  { %490 = vmatprep.mubr.f32.mxu0 %v2352_v3 }
  0x82   :  { %2069 = vmatmul.mubr.msk.f32.gmra.mxu0 %vm101_vm0, %v63_v8 }
  0x83   :  { %496 = vmatprep.mubr.f32.mxu0 %v2352_v3 }
  0x86   :  { %2070 = vmatmul.mubr.msk.f32.gmra.mxu0 %vm101_vm0, %v64_v9 }
  0x87   :  { %502 = vmatprep.mubr.f32.mxu0 %v2352_v3 }
  0x8a   :  { %2071 = vmatmul.mubr.msk.f32.gmra.mxu0 %vm101_vm0, %v65_v10 }
  0x8b   :  { %508 = vmatprep.mubr.f32.mxu0 %v2352_v3 }
  0x8e   :  { %2072 = vmatmul.mubr.msk.f32.gmra.mxu0 %vm101_vm0, %v66_v11 }
  0x8f   :  { %514 = vmatprep.mubr.f32.mxu0 %v2352_v3 }
  0x92   :  { %2073 = vmatmul.mubr.msk.f32.gmra.mxu0 %vm101_vm0, %v67_v12 }
  0x93   :  { %520 = vmatprep.mubr.f32.mxu0 %v2352_v3 }
  0x96   :  { %2074 = vmatmul.mubr.msk.f32.gmra.mxu0 %vm101_vm0, %v68_v13 }
  0x97   :  { %526 = vmatprep.mubr.f32.mxu0 %v2352_v3 }
  0x9a   :  { %2075 = vmatmul.mubr.msk.f32.gmra.mxu0 %vm101_vm0, %v69_v14 }
  0x9b   :  { %532 = vmatprep.mubr.f32.mxu0 %v2352_v3 }
  0x9e   :  { %2076 = vmatmul.mubr.msk.f32.gmra.mxu0 %vm101_vm0, %v70_v15 }
  0x9f   :  { %538 = vmatprep.mubr.f32.mxu0 %v2352_v3 }
  0xa2   :  { %2077 = vmatmul.mubr.msk.f32.gmra.mxu0 %vm101_vm0, %v71_v16 }
  0xa3   :  { %544 = vmatprep.mubr.f32.mxu0 %v2352_v3 }
  0xa6   :  { %2078 = vmatmul.mubr.msk.f32.gmra.mxu0 %vm101_vm0, %v72_v17 }
  0xa7   :  { %550 = vmatprep.mubr.f32.mxu0 %v2352_v3 }
  0xaa   :  { %2079 = vmatmul.mubr.msk.f32.gmra.mxu0 %vm101_vm0, %v73_v18 }
  0xab   :  { %556 = vmatprep.mubr.f32.mxu0 %v2352_v3 }
  0xae   :  { %2080 = vmatmul.mubr.msk.f32.gmra.mxu0 %vm101_vm0, %v74_v19 }
  0xaf   :  { %562 = vmatprep.mubr.f32.mxu0 %v2352_v3 }
  0xb2   :  { %2081 = vmatmul.mubr.msk.f32.gmra.mxu0 %vm101_vm0, %v75_v20 }
  0xb3   :  { %568 = vmatprep.mubr.f32.mxu0 %v2352_v3 }
  0xb6   :  { %2082 = vmatmul.mubr.msk.f32.gmra.mxu0 %vm101_vm0, %v76_v21 }
  0xb7   :  { %574 = vmatprep.mubr.f32.mxu0 %v2352_v3 }
  0xba   :  { %2083 = vmatmul.mubr.msk.f32.gmra.mxu0 %vm101_vm0, %v77_v22 }
  0xbb   :  { %580 = vmatprep.mubr.f32.mxu0 %v2352_v3 }
  0xbe   :  { %2084 = vmatmul.mubr.msk.f32.gmra.mxu0 %vm101_vm0, %v78_v23 }
  0xbf   :  { %586 = vmatprep.mubr.f32.mxu0 %v2352_v3 }
  0xc2   :  { %2085 = vmatmul.mubr.msk.f32.gmra.mxu0 %vm101_vm0, %v79_v25 }
  0xc3   :  { %592 = vmatprep.mubr.f32.mxu0 %v2352_v3 }
  0xc6   :  { %2086 = vmatmul.mubr.msk.f32.gmra.mxu0 %vm101_vm0, %v80_v27 }
  0xca   :  { %v312_v33 = vpop.f32.mrf.mxu0 }
  0xcb   :  { %v313_v34 = vadd.f32 %v312_v33, %v2805_v31 }
  0xcc   :  { %v314_v35 = vpop.f32.mrf.mxu0 }
  0xcd   :  { %v315_v36 = vadd.f32 %v314_v35, %v2807_v32  ;;  %v695_v37 = vmul.f32 0.2, %v313_v34  ;;  %vm599_vm2 = vcmp.gt.f32.partialorder %v313_v34, 0.0 }
  0xce   :  { %v318_v38 = vpop.f32.mrf.mxu0 }
  0xcf   :  { %v319_v39 = vadd.f32 %v318_v38, %v2805_v31  ;;  %vm600_vm1 = vcmp.gt.f32.partialorder %v315_v36, 0.0  ;;  %v696_v40 = vmul.f32 0.2, %v315_v36  ;;  %v791_v46 = vsel %vm599_vm2, %v313_v34, %v695_v37 }
  0xd0   :  { %v320_v41 = vpop.f32.mrf.mxu0 }
  0xd1   :  { %v321_v42 = vadd.f32 %v320_v41, %v2807_v32  ;;  %v792_v43 = vsel %vm600_vm1, %v315_v36, %v696_v40  ;;  %v697_v44 = vmul.f32 0.2, %v319_v39  ;;  %vm601_vm4 = vcmp.gt.f32.partialorder %v319_v39, 0.0 }
  0xd2   :  { %v324_v45 = vpop.f32.mrf.mxu0  ;;  %990 = vmatprep.mubr.f32.mxu1 %v792_v43 }
  0xd3   :  { %v325_v47 = vadd.f32 %v324_v45, %v2805_v31  ;;  %991 = vmatmul.mubr.f32.vlgmr.msra.gmra.mxu1 %v791_v46  ;;  %vm602_vm3 = vcmp.gt.f32.partialorder %v321_v42, 0.0  ;;  %v698_v48 = vmul.f32 0.2, %v321_v42  ;;  %v793_v54 = vsel %vm601_vm4, %v319_v39, %v697_v44 }
  0xd4   :  { %v326_v49 = vpop.f32.mrf.mxu0 }
  0xd5   :  { %v327_v50 = vadd.f32 %v326_v49, %v2807_v32  ;;  %v794_v51 = vsel %vm602_vm3, %v321_v42, %v698_v48  ;;  %v699_v52 = vmul.f32 0.2, %v325_v47  ;;  %vm603_vm6 = vcmp.gt.f32.partialorder %v325_v47, 0.0 }
  0xd6   :  { %v330_v53 = vpop.f32.mrf.mxu0  ;;  %995 = vmatprep.mubr.f32.mxu1 %v794_v51 }
  0xd7   :  { %v331_v55 = vadd.f32 %v330_v53, %v2805_v31  ;;  %996 = vmatmul.mubr.f32.gmra.mxu1 %v793_v54  ;;  %vm604_vm5 = vcmp.gt.f32.partialorder %v327_v50, 0.0  ;;  %v700_v56 = vmul.f32 0.2, %v327_v50  ;;  %v795_v62 = vsel %vm603_vm6, %v325_v47, %v699_v52 }
  0xd8   :  { %v332_v57 = vpop.f32.mrf.mxu0 }
  0xd9   :  { %v333_v58 = vadd.f32 %v332_v57, %v2807_v32  ;;  %v796_v59 = vsel %vm604_vm5, %v327_v50, %v700_v56  ;;  %v701_v60 = vmul.f32 0.2, %v331_v55  ;;  %vm605_vm8 = vcmp.gt.f32.partialorder %v331_v55, 0.0 }
  0xda   :  { %v336_v61 = vpop.f32.mrf.mxu0  ;;  %1000 = vmatprep.mubr.f32.mxu1 %v796_v59 }
  0xdb   :  { %v337_v63 = vadd.f32 %v336_v61, %v2805_v31  ;;  %1001 = vmatmul.mubr.f32.gmra.mxu1 %v795_v62  ;;  %vm606_vm7 = vcmp.gt.f32.partialorder %v333_v58, 0.0  ;;  %v702_v0 = vmul.f32 0.2, %v333_v58  ;;  %v797_v7 = vsel %vm605_vm8, %v331_v55, %v701_v60 }
  0xdc   :  { %v338_v1 = vpop.f32.mrf.mxu0 }
  0xdd   :  { %v339_v2 = vadd.f32 %v338_v1, %v2807_v32  ;;  %v798_v4 = vsel %vm606_vm7, %v333_v58, %v702_v0  ;;  %v703_v5 = vmul.f32 0.2, %v337_v63  ;;  %vm607_vm10 = vcmp.gt.f32.partialorder %v337_v63, 0.0 }
  0xde   :  { %v342_v6 = vpop.f32.mrf.mxu0  ;;  %1005 = vmatprep.mubr.f32.mxu1 %v798_v4 }
  0xdf   :  { %v343_v8 = vadd.f32 %v342_v6, %v2805_v31  ;;  %1006 = vmatmul.mubr.f32.gmra.mxu1 %v797_v7  ;;  %vm608_vm9 = vcmp.gt.f32.partialorder %v339_v2, 0.0  ;;  %v704_v9 = vmul.f32 0.2, %v339_v2  ;;  %v799_v15 = vsel %vm607_vm10, %v337_v63, %v703_v5 }
  0xe0   :  { %v344_v10 = vpop.f32.mrf.mxu0 }
  0xe1   :  { %v345_v11 = vadd.f32 %v344_v10, %v2807_v32  ;;  %v800_v12 = vsel %vm608_vm9, %v339_v2, %v704_v9  ;;  %v705_v13 = vmul.f32 0.2, %v343_v8  ;;  %vm609_vm12 = vcmp.gt.f32.partialorder %v343_v8, 0.0 }
  0xe2   :  { %v348_v14 = vpop.f32.mrf.mxu0  ;;  %1010 = vmatprep.mubr.f32.mxu1 %v800_v12 }
  0xe3   :  { %v349_v16 = vadd.f32 %v348_v14, %v2805_v31  ;;  %1011 = vmatmul.mubr.f32.gmra.mxu1 %v799_v15  ;;  %vm610_vm11 = vcmp.gt.f32.partialorder %v345_v11, 0.0  ;;  %v706_v17 = vmul.f32 0.2, %v345_v11  ;;  %v801_v23 = vsel %vm609_vm12, %v343_v8, %v705_v13  ;;  %v1390_v8 = vld [vmem:[%s3187_s5 + $0x78] sm:$0xff]  ;;  %v1389_v14 = vld [vmem:[%s3187_s5 + $0x70] sm:$0xff] }
  0xe4   :  { %v350_v18 = vpop.f32.mrf.mxu0  ;;  %2204 = vmatprep.subr.mxu0 %v1390_v8 }
  0xe5   :  { %v351_v19 = vadd.f32 %v350_v18, %v2807_v32  ;;  %v802_v20 = vsel %vm610_vm11, %v345_v11, %v706_v17  ;;  %v707_v21 = vmul.f32 0.2, %v349_v16  ;;  %vm611_vm14 = vcmp.gt.f32.partialorder %v349_v16, 0.0  ;;  %2205 = vmatpush3.msra.mxu0 %v1390_v8  ;;  %v1388_v18 = vld [vmem:[%s3187_s5 + $0x68] sm:$0xff] }
  0xe6   :  { %v354_v22 = vpop.f32.mrf.mxu0  ;;  %1015 = vmatprep.mubr.f32.mxu1 %v802_v20  ;;  %2206 = vmatprep.subr.mxu0 %v1389_v14 }
  0xe7   :  { %v355_v25 = vadd.f32 %v354_v22, %v2805_v31  ;;  %1016 = vmatmul.mubr.f32.gmra.mxu1 %v801_v23  ;;  %vm612_vm13 = vcmp.gt.f32.partialorder %v351_v19, 0.0  ;;  %v708_v27 = vmul.f32 0.2, %v351_v19  ;;  %v803_v35 = vsel %vm611_vm14, %v349_v16, %v707_v21  ;;  %2207 = vmatpush3.msra.mxu0 %v1389_v14 }
  0xe8   :  { %v356_v28 = vpop.f32.mrf.mxu0  ;;  %2208 = vmatprep.subr.mxu0 %v1388_v18 }
  0xe9   :  { %v357_v29 = vadd.f32 %v356_v28, %v2807_v32  ;;  %v804_v30 = vsel %vm612_vm13, %v351_v19, %v708_v27  ;;  %v709_v33 = vmul.f32 0.2, %v355_v25  ;;  %vm613_vm0 = vcmp.gt.f32.partialorder %v355_v25, 0.0  ;;  %2209 = vmatpush3.msra.mxu0 %v1388_v18 }
  0xea   :  { %v360_v34 = vpop.f32.mrf.mxu0  ;;  %1020 = vmatprep.mubr.f32.mxu1 %v804_v30  ;;  %v1386_v30 = vld [vmem:[%s3187_s5 + $0x58] sm:$0xff] }
  0xeb   :  { %v361_v36 = vadd.f32 %v360_v34, %v2805_v31  ;;  %1021 = vmatmul.mubr.f32.gmra.mxu1 %v803_v35  ;;  %vm614_vm15 = vcmp.gt.f32.partialorder %v357_v29, 0.0  ;;  %v710_v37 = vmul.f32 0.2, %v357_v29  ;;  %v805_v43 = vsel %vm613_vm0, %v355_v25, %v709_v33  ;;  %v1387_v25 = vld [vmem:[%s3187_s5 + $0x60] sm:$0xff] }
  0xec   :  { %v362_v38 = vpop.f32.mrf.mxu0  ;;  %2210 = vmatprep.subr.mxu0 %v1387_v25 }
  0xed   :  { %v363_v39 = vadd.f32 %v362_v38, %v2807_v32  ;;  %v806_v40 = vsel %vm614_vm15, %v357_v29, %v710_v37  ;;  %v711_v41 = vmul.f32 0.2, %v361_v36  ;;  %vm615_vm2 = vcmp.gt.f32.partialorder %v361_v36, 0.0  ;;  %2211 = vmatpush3.msra.mxu0 %v1387_v25  ;;  %v1385_v38 = vld [vmem:[%s3187_s5 + $0x50] sm:$0xff] }
  0xee   :  { %v366_v42 = vpop.f32.mrf.mxu0  ;;  %1025 = vmatprep.mubr.f32.mxu1 %v806_v40  ;;  %2212 = vmatprep.subr.mxu0 %v1386_v30 }
  0xef   :  { %v367_v44 = vadd.f32 %v366_v42, %v2805_v31  ;;  %1026 = vmatmul.mubr.f32.gmra.mxu1 %v805_v43  ;;  %vm616_vm1 = vcmp.gt.f32.partialorder %v363_v39, 0.0  ;;  %v712_v45 = vmul.f32 0.2, %v363_v39  ;;  %v807_v51 = vsel %vm615_vm2, %v361_v36, %v711_v41  ;;  %2213 = vmatpush3.msra.mxu0 %v1386_v30  ;;  %v1384_v42 = vld [vmem:[%s3187_s5 + $0x48] sm:$0xff] }
  0xf0   :  { %v368_v46 = vpop.f32.mrf.mxu0  ;;  %2214 = vmatprep.subr.mxu0 %v1385_v38 }
  0xf1   :  { %v369_v47 = vadd.f32 %v368_v46, %v2807_v32  ;;  %v808_v48 = vsel %vm616_vm1, %v363_v39, %v712_v45  ;;  %v713_v49 = vmul.f32 0.2, %v367_v44  ;;  %vm617_vm4 = vcmp.gt.f32.partialorder %v367_v44, 0.0  ;;  %2215 = vmatpush3.msra.mxu0 %v1385_v38 }
  0xf2   :  { %v372_v50 = vpop.f32.mrf.mxu0  ;;  %1030 = vmatprep.mubr.f32.mxu1 %v808_v48  ;;  %2216 = vmatprep.subr.mxu0 %v1384_v42  ;;  %v1383_v48 = vld [vmem:[%s3187_s5 + $0x40] sm:$0xff] }
  0xf3   :  { %v373_v52 = vadd.f32 %v372_v50, %v2805_v31  ;;  %1031 = vmatmul.mubr.f32.gmra.mxu1 %v807_v51  ;;  %vm618_vm3 = vcmp.gt.f32.partialorder %v369_v47, 0.0  ;;  %v714_v53 = vmul.f32 0.2, %v369_v47  ;;  %v809_v59 = vsel %vm617_vm4, %v367_v44, %v713_v49  ;;  %2217 = vmatpush3.msra.mxu0 %v1384_v42  ;;  %v1382_v51 = vld [vmem:[%s3187_s5 + $0x38] sm:$0xff] }
  0xf4   :  { %v374_v54 = vpop.f32.mrf.mxu0  ;;  %2218 = vmatprep.subr.mxu0 %v1383_v48 }
  0xf5   :  { %v375_v55 = vadd.f32 %v374_v54, %v2807_v32  ;;  %v810_v56 = vsel %vm618_vm3, %v369_v47, %v714_v53  ;;  %v715_v57 = vmul.f32 0.2, %v373_v52  ;;  %vm619_vm6 = vcmp.gt.f32.partialorder %v373_v52, 0.0  ;;  %2219 = vmatpush3.msra.mxu0 %v1383_v48 }
  0xf6   :  { %v378_v58 = vpop.f32.mrf.mxu0  ;;  %1035 = vmatprep.mubr.f32.mxu1 %v810_v56  ;;  %2220 = vmatprep.subr.mxu0 %v1382_v51 }
  0xf7   :  { %v379_v60 = vadd.f32 %v378_v58, %v2805_v31  ;;  %1036 = vmatmul.mubr.f32.gmra.mxu1 %v809_v59  ;;  %vm620_vm5 = vcmp.gt.f32.partialorder %v375_v55, 0.0  ;;  %v716_v61 = vmul.f32 0.2, %v375_v55  ;;  %v811_v4 = vsel %vm619_vm6, %v373_v52, %v715_v57  ;;  %2221 = vmatpush3.msra.mxu0 %v1382_v51  ;;  %v1381_v58 = vld [vmem:[%s3187_s5 + $0x30] sm:$0xff] }
  0xf8   :  { %v380_v62 = vpop.f32.mrf.mxu0  ;;  %2222 = vmatprep.subr.mxu0 %v1381_v58 }
  0xf9   :  { %v381_v63 = vadd.f32 %v380_v62, %v2807_v32  ;;  %v812_v0 = vsel %vm620_vm5, %v375_v55, %v716_v61  ;;  %v717_v1 = vmul.f32 0.2, %v379_v60  ;;  %vm621_vm8 = vcmp.gt.f32.partialorder %v379_v60, 0.0  ;;  %v1380_v61 = vld [vmem:[%s3187_s5 + $0x28] sm:$0xff]  ;;  %2223 = vmatpush3.msra.mxu0 %v1381_v58 }
  0xfa   :  { %v384_v2 = vpop.f32.mrf.mxu0  ;;  %1040 = vmatprep.mubr.f32.mxu1 %v812_v0  ;;  %2224 = vmatprep.subr.mxu0 %v1380_v61 }
  0xfb   :  { %v385_v5 = vadd.f32 %v384_v2, %v2805_v31  ;;  %1041 = vmatmul.mubr.f32.gmra.mxu1 %v811_v4  ;;  %vm622_vm7 = vcmp.gt.f32.partialorder %v381_v63, 0.0  ;;  %v718_v6 = vmul.f32 0.2, %v381_v63  ;;  %v813_v13 = vsel %vm621_vm8, %v379_v60, %v717_v1  ;;  %2225 = vmatpush3.msra.mxu0 %v1380_v61 }
  0xfc   :  { %v386_v7 = vpop.f32.mrf.mxu0 }
  0xfd   :  { %v387_v9 = vadd.f32 %v386_v7, %v2807_v32  ;;  %v814_v10 = vsel %vm622_vm7, %v381_v63, %v718_v6  ;;  %v719_v11 = vmul.f32 0.2, %v385_v5  ;;  %vm623_vm10 = vcmp.gt.f32.partialorder %v385_v5, 0.0 }
  0xfe   :  { %v390_v12 = vpop.f32.mrf.mxu0  ;;  %1045 = vmatprep.mubr.f32.mxu1 %v814_v10 }
  0xff   :  { %v391_v15 = vadd.f32 %v390_v12, %v2805_v31  ;;  %1046 = vmatmul.mubr.f32.gmra.mxu1 %v813_v13  ;;  %vm624_vm9 = vcmp.gt.f32.partialorder %v387_v9, 0.0  ;;  %v720_v16 = vmul.f32 0.2, %v387_v9  ;;  %v815_v23 = vsel %vm623_vm10, %v385_v5, %v719_v11  ;;  %v1379_v5 = vld [vmem:[%s3187_s5 + $0x20] sm:$0xff] }
 0x100   :  { %v392_v17 = vpop.f32.mrf.mxu0  ;;  %2226 = vmatprep.subr.mxu0 %v1379_v5 }
 0x101   :  { %v393_v19 = vadd.f32 %v392_v17, %v2807_v32  ;;  %v816_v20 = vsel %vm624_vm9, %v387_v9, %v720_v16  ;;  %v721_v21 = vmul.f32 0.2, %v391_v15  ;;  %vm625_vm12 = vcmp.gt.f32.partialorder %v391_v15, 0.0  ;;  %2227 = vmatpush3.msra.mxu0 %v1379_v5  ;;  %v1378_v9 = vld [vmem:[%s3187_s5 + $0x18] sm:$0xff] }
 0x102   :  { %v396_v22 = vpop.f32.mrf.mxu0  ;;  %1050 = vmatprep.mubr.f32.mxu1 %v816_v20  ;;  %2228 = vmatprep.subr.mxu0 %v1378_v9 }
 0x103   :  { %v397_v27 = vadd.f32 %v396_v22, %v2805_v31  ;;  %1051 = vmatmul.mubr.f32.gmra.mxu1 %v815_v23  ;;  %vm626_vm11 = vcmp.gt.f32.partialorder %v393_v19, 0.0  ;;  %v722_v28 = vmul.f32 0.2, %v393_v19  ;;  %v817_v37 = vsel %vm625_vm12, %v391_v15, %v721_v21  ;;  %2229 = vmatpush3.msra.mxu0 %v1378_v9  ;;  %v1377_v15 = vld [vmem:[%s3187_s5 + $0x10] sm:$0xff] }
 0x104   :  { %v398_v29 = vpop.f32.mrf.mxu0  ;;  %2230 = vmatprep.subr.mxu0 %v1377_v15 }
 0x105   :  { %v399_v33 = vadd.f32 %v398_v29, %v2807_v32  ;;  %v818_v34 = vsel %vm626_vm11, %v393_v19, %v722_v28  ;;  %v723_v35 = vmul.f32 0.2, %v397_v27  ;;  %vm627_vm14 = vcmp.gt.f32.partialorder %v397_v27, 0.0  ;;  %2231 = vmatpush3.msra.mxu0 %v1377_v15  ;;  %v1376_v19 = vld [vmem:[%s3187_s5 + $0x8] sm:$0xff] }
 0x106   :  { %v402_v36 = vpop.f32.mrf.mxu0  ;;  %1055 = vmatprep.mubr.f32.mxu1 %v818_v34  ;;  %2232 = vmatprep.subr.mxu0 %v1376_v19 }
 0x107   :  { %v403_v39 = vadd.f32 %v402_v36, %v2805_v31  ;;  %1056 = vmatmul.mubr.f32.gmra.mxu1 %v817_v37  ;;  %vm628_vm13 = vcmp.gt.f32.partialorder %v399_v33, 0.0  ;;  %v724_v40 = vmul.f32 0.2, %v399_v33  ;;  %v819_v47 = vsel %vm627_vm14, %v397_v27, %v723_v35  ;;  %2233 = vmatpush3.msra.mxu0 %v1376_v19  ;;  %v1375_v27 = vld [vmem:[%s3187_s5] sm:$0xff] }
 0x108   :  { %v404_v41 = vpop.f32.mrf.mxu0  ;;  %2234 = vmatprep.subr.mxu0 %v1375_v27 }
 0x109   :  { %v405_v43 = vadd.f32 %v404_v41, %v2807_v32  ;;  %v820_v44 = vsel %vm628_vm13, %v399_v33, %v724_v40  ;;  %v725_v45 = vmul.f32 0.2, %v403_v39  ;;  %vm629_vm0 = vcmp.gt.f32.partialorder %v403_v39, 0.0  ;;  %2235 = vmatpush3.msra.mxu0 %v1375_v27 }
 0x10a   :  { %v408_v46 = vpop.f32.mrf.mxu0  ;;  %1060 = vmatprep.mubr.f32.mxu1 %v820_v44  ;;  %2308 = vmatprep.subr.mxu0 %v2352_v3 }
 0x10b   :  { %v409_v49 = vadd.f32 %v408_v46, %v2805_v31  ;;  %1061 = vmatmul.mubr.f32.gmra.mxu1 %v819_v47  ;;  %vm630_vm15 = vcmp.gt.f32.partialorder %v405_v43, 0.0  ;;  %v726_v50 = vmul.f32 0.2, %v405_v43  ;;  %v821_v57 = vsel %vm629_vm0, %v403_v39, %v725_v45 }
 0x10c   :  { %v410_v52 = vpop.f32.mrf.mxu0 }
 0x10d   :  { %v411_v53 = vadd.f32 %v410_v52, %v2807_v32  ;;  %v822_v54 = vsel %vm630_vm15, %v405_v43, %v726_v50  ;;  %v727_v55 = vmul.f32 0.2, %v409_v49  ;;  %vm631_vm2 = vcmp.gt.f32.partialorder %v409_v49, 0.0 }
 0x10e   :  { %v414_v56 = vpop.f32.mrf.mxu0  ;;  %1065 = vmatprep.mubr.f32.mxu1 %v822_v54 }
 0x10f   :  { %v415_v59 = vadd.f32 %v414_v56, %v2805_v31  ;;  %1066 = vmatmul.mubr.f32.gmra.mxu1 %v821_v57  ;;  %vm632_vm1 = vcmp.gt.f32.partialorder %v411_v53, 0.0  ;;  %v728_v60 = vmul.f32 0.2, %v411_v53  ;;  %v823_v4 = vsel %vm631_vm2, %v409_v49, %v727_v55 }
 0x110   :  { %v416_v62 = vpop.f32.mrf.mxu0 }
 0x111   :  { %v417_v63 = vadd.f32 %v416_v62, %v2807_v32  ;;  %v824_v0 = vsel %vm632_vm1, %v411_v53, %v728_v60  ;;  %v729_v1 = vmul.f32 0.2, %v415_v59  ;;  %vm633_vm4 = vcmp.gt.f32.partialorder %v415_v59, 0.0 }
 0x112   :  { %v420_v2 = vpop.f32.mrf.mxu0  ;;  %1070 = vmatprep.mubr.f32.mxu1 %v824_v0 }
 0x113   :  { %v730_v6 = vmul.f32 0.2, %v417_v63  ;;  %v421_v7 = vadd.f32 %v420_v2, %v2805_v31  ;;  %1071 = vmatmul.mubr.f32.gmra.mxu1 %v823_v4  ;;  %vm634_vm3 = vcmp.gt.f32.partialorder %v417_v63, 0.0  ;;  %v825_v14 = vsel %vm633_vm4, %v415_v59, %v729_v1 }
 0x114   :  { %v422_v8 = vpop.f32.mrf.mxu0 }
 0x115   :  { %v423_v10 = vadd.f32 %v422_v8, %v2807_v32  ;;  %v826_v11 = vsel %vm634_vm3, %v417_v63, %v730_v6  ;;  %v731_v12 = vmul.f32 0.2, %v421_v7  ;;  %vm635_vm6 = vcmp.gt.f32.partialorder %v421_v7, 0.0 }
 0x116   :  { %v426_v13 = vpop.f32.mrf.mxu0  ;;  %1075 = vmatprep.mubr.f32.mxu1 %v826_v11 }
 0x117   :  { %v732_v16 = vmul.f32 0.2, %v423_v10  ;;  %v427_v17 = vadd.f32 %v426_v13, %v2805_v31  ;;  %1076 = vmatmul.mubr.f32.gmra.mxu1 %v825_v14  ;;  %vm636_vm5 = vcmp.gt.f32.partialorder %v423_v10, 0.0  ;;  %v827_v25 = vsel %vm635_vm6, %v421_v7, %v731_v12 }
 0x118   :  { %v428_v18 = vpop.f32.mrf.mxu0 }
 0x119   :  { %v429_v20 = vadd.f32 %v428_v18, %v2807_v32  ;;  %v828_v21 = vsel %vm636_vm5, %v423_v10, %v732_v16  ;;  %v733_v22 = vmul.f32 0.2, %v427_v17  ;;  %vm637_vm8 = vcmp.gt.f32.partialorder %v427_v17, 0.0 }
 0x11a   :  { %v432_v23 = vpop.f32.mrf.mxu0  ;;  %1080 = vmatprep.mubr.f32.mxu1 %v828_v21 }
 0x11b   :  { %v734_v28 = vmul.f32 0.2, %v429_v20  ;;  %v433_v29 = vadd.f32 %v432_v23, %v2805_v31  ;;  %1081 = vmatmul.mubr.f32.gmra.mxu1 %v827_v25  ;;  %vm638_vm7 = vcmp.gt.f32.partialorder %v429_v20, 0.0  ;;  %v829_v37 = vsel %vm637_vm8, %v427_v17, %v733_v22 }
 0x11c   :  { %v434_v30 = vpop.f32.mrf.mxu0 }
 0x11d   :  { %v435_v33 = vadd.f32 %v434_v30, %v2807_v32  ;;  %v830_v34 = vsel %vm638_vm7, %v429_v20, %v734_v28  ;;  %v735_v35 = vmul.f32 0.2, %v433_v29  ;;  %vm639_vm10 = vcmp.gt.f32.partialorder %v433_v29, 0.0 }
 0x11e   :  { %v438_v36 = vpop.f32.mrf.mxu0  ;;  %1085 = vmatprep.mubr.f32.mxu1 %v830_v34 }
 0x11f   :  { %v736_v38 = vmul.f32 0.2, %v435_v33  ;;  %v439_v39 = vadd.f32 %v438_v36, %v2805_v31  ;;  %1086 = vmatmul.mubr.f32.gmra.mxu1 %v829_v37  ;;  %vm640_vm9 = vcmp.gt.f32.partialorder %v435_v33, 0.0  ;;  %v831_v45 = vsel %vm639_vm10, %v433_v29, %v735_v35 }
 0x120   :  { %v440_v40 = vpop.f32.mrf.mxu0 }
 0x121   :  { %v441_v41 = vadd.f32 %v440_v40, %v2807_v32  ;;  %v832_v42 = vsel %vm640_vm9, %v435_v33, %v736_v38  ;;  %v737_v43 = vmul.f32 0.2, %v439_v39  ;;  %vm641_vm12 = vcmp.gt.f32.partialorder %v439_v39, 0.0 }
 0x122   :  { %v444_v44 = vpop.f32.mrf.mxu0  ;;  %1090 = vmatprep.mubr.f32.mxu1 %v832_v42 }
 0x123   :  { %v738_v46 = vmul.f32 0.2, %v441_v41  ;;  %v445_v47 = vadd.f32 %v444_v44, %v2805_v31  ;;  %1091 = vmatmul.mubr.f32.gmra.mxu1 %v831_v45  ;;  %vm642_vm11 = vcmp.gt.f32.partialorder %v441_v41, 0.0  ;;  %v833_v53 = vsel %vm641_vm12, %v439_v39, %v737_v43 }
 0x124   :  { %v446_v48 = vpop.f32.mrf.mxu0 }
 0x125   :  { %v447_v49 = vadd.f32 %v446_v48, %v2807_v32  ;;  %v834_v50 = vsel %vm642_vm11, %v441_v41, %v738_v46  ;;  %v739_v51 = vmul.f32 0.2, %v445_v47  ;;  %vm643_vm14 = vcmp.gt.f32.partialorder %v445_v47, 0.0 }
 0x126   :  { %v450_v52 = vpop.f32.mrf.mxu0  ;;  %1095 = vmatprep.mubr.f32.mxu1 %v834_v50 }
 0x127   :  { %v740_v54 = vmul.f32 0.2, %v447_v49  ;;  %v451_v55 = vadd.f32 %v450_v52, %v2805_v31  ;;  %1096 = vmatmul.mubr.f32.gmra.mxu1 %v833_v53  ;;  %vm644_vm13 = vcmp.gt.f32.partialorder %v447_v49, 0.0  ;;  %v835_v61 = vsel %vm643_vm14, %v445_v47, %v739_v51 }
 0x128   :  { %v452_v56 = vpop.f32.mrf.mxu0 }
 0x129   :  { %v453_v57 = vadd.f32 %v452_v56, %v2807_v32  ;;  %v836_v58 = vsel %vm644_vm13, %v447_v49, %v740_v54  ;;  %v741_v59 = vmul.f32 0.2, %v451_v55  ;;  %vm645_vm0 = vcmp.gt.f32.partialorder %v451_v55, 0.0 }
 0x12a   :  { %v456_v60 = vpop.f32.mrf.mxu0  ;;  %1100 = vmatprep.mubr.f32.mxu1 %v836_v58 }
 0x12b   :  { %v742_v62 = vmul.f32 0.2, %v453_v57  ;;  %v457_v63 = vadd.f32 %v456_v60, %v2805_v31  ;;  %1101 = vmatmul.mubr.f32.gmra.mxu1 %v835_v61  ;;  %vm646_vm15 = vcmp.gt.f32.partialorder %v453_v57, 0.0  ;;  %v837_v6 = vsel %vm645_vm0, %v451_v55, %v741_v59 }
 0x12c   :  { %v458_v0 = vpop.f32.mrf.mxu0 }
 0x12d   :  { %v459_v1 = vadd.f32 %v458_v0, %v2807_v32  ;;  %v838_v2 = vsel %vm646_vm15, %v453_v57, %v742_v62  ;;  %v743_v4 = vmul.f32 0.2, %v457_v63  ;;  %vm647_vm2 = vcmp.gt.f32.partialorder %v457_v63, 0.0 }
 0x12e   :  { %v462_v5 = vpop.f32.mrf.mxu0  ;;  %1105 = vmatprep.mubr.f32.mxu1 %v838_v2 }
 0x12f   :  { %v744_v7 = vmul.f32 0.2, %v459_v1  ;;  %v463_v8 = vadd.f32 %v462_v5, %v2805_v31  ;;  %1106 = vmatmul.mubr.f32.gmra.mxu1 %v837_v6  ;;  %vm648_vm1 = vcmp.gt.f32.partialorder %v459_v1, 0.0  ;;  %v839_v14 = vsel %vm647_vm2, %v457_v63, %v743_v4 }
 0x130   :  { %v464_v9 = vpop.f32.mrf.mxu0 }
 0x131   :  { %v465_v10 = vadd.f32 %v464_v9, %v2807_v32  ;;  %v840_v11 = vsel %vm648_vm1, %v459_v1, %v744_v7  ;;  %v745_v12 = vmul.f32 0.2, %v463_v8  ;;  %vm649_vm4 = vcmp.gt.f32.partialorder %v463_v8, 0.0 }
 0x132   :  { %v468_v13 = vpop.f32.mrf.mxu0  ;;  %1110 = vmatprep.mubr.f32.mxu1 %v840_v11 }
 0x133   :  { %v746_v15 = vmul.f32 0.2, %v465_v10  ;;  %v469_v16 = vadd.f32 %v468_v13, %v2805_v31  ;;  %1111 = vmatmul.mubr.f32.gmra.mxu1 %v839_v14  ;;  %vm650_vm3 = vcmp.gt.f32.partialorder %v465_v10, 0.0  ;;  %v841_v22 = vsel %vm649_vm4, %v463_v8, %v745_v12 }
 0x134   :  { %v470_v17 = vpop.f32.mrf.mxu0 }
 0x135   :  { %v471_v18 = vadd.f32 %v470_v17, %v2807_v32  ;;  %v842_v19 = vsel %vm650_vm3, %v465_v10, %v746_v15  ;;  %v747_v20 = vmul.f32 0.2, %v469_v16  ;;  %vm651_vm6 = vcmp.gt.f32.partialorder %v469_v16, 0.0 }
 0x136   :  { %v474_v21 = vpop.f32.mrf.mxu0  ;;  %1115 = vmatprep.mubr.f32.mxu1 %v842_v19 }
 0x137   :  { %v748_v23 = vmul.f32 0.2, %v471_v18  ;;  %v475_v25 = vadd.f32 %v474_v21, %v2805_v31  ;;  %1116 = vmatmul.mubr.f32.gmra.mxu1 %v841_v22  ;;  %vm652_vm5 = vcmp.gt.f32.partialorder %v471_v18, 0.0  ;;  %v843_v34 = vsel %vm651_vm6, %v469_v16, %v747_v20 }
 0x138   :  { %v476_v27 = vpop.f32.mrf.mxu0 }
 0x139   :  { %v477_v28 = vadd.f32 %v476_v27, %v2807_v32  ;;  %v844_v29 = vsel %vm652_vm5, %v471_v18, %v748_v23  ;;  %v749_v30 = vmul.f32 0.2, %v475_v25  ;;  %vm653_vm8 = vcmp.gt.f32.partialorder %v475_v25, 0.0 }
 0x13a   :  { %v480_v33 = vpop.f32.mrf.mxu0  ;;  %1120 = vmatprep.mubr.f32.mxu1 %v844_v29 }
 0x13b   :  { %v750_v35 = vmul.f32 0.2, %v477_v28  ;;  %v481_v36 = vadd.f32 %v480_v33, %v2805_v31  ;;  %1121 = vmatmul.mubr.f32.gmra.mxu1 %v843_v34  ;;  %vm654_vm7 = vcmp.gt.f32.partialorder %v477_v28, 0.0  ;;  %v845_v42 = vsel %vm653_vm8, %v475_v25, %v749_v30 }
 0x13c   :  { %v482_v37 = vpop.f32.mrf.mxu0 }
 0x13d   :  { %v483_v38 = vadd.f32 %v482_v37, %v2807_v32  ;;  %v846_v39 = vsel %vm654_vm7, %v477_v28, %v750_v35  ;;  %v751_v40 = vmul.f32 0.2, %v481_v36  ;;  %vm655_vm10 = vcmp.gt.f32.partialorder %v481_v36, 0.0 }
 0x13e   :  { %v486_v41 = vpop.f32.mrf.mxu0  ;;  %1125 = vmatprep.mubr.f32.mxu1 %v846_v39 }
 0x13f   :  { %v752_v43 = vmul.f32 0.2, %v483_v38  ;;  %v487_v44 = vadd.f32 %v486_v41, %v2805_v31  ;;  %1126 = vmatmul.mubr.f32.gmra.mxu1 %v845_v42  ;;  %vm656_vm9 = vcmp.gt.f32.partialorder %v483_v38, 0.0  ;;  %v847_v50 = vsel %vm655_vm10, %v481_v36, %v751_v40 }
 0x140   :  { %v488_v45 = vpop.f32.mrf.mxu0 }
 0x141   :  { %v489_v46 = vadd.f32 %v488_v45, %v2807_v32  ;;  %v848_v47 = vsel %vm656_vm9, %v483_v38, %v752_v43  ;;  %v753_v48 = vmul.f32 0.2, %v487_v44  ;;  %vm657_vm12 = vcmp.gt.f32.partialorder %v487_v44, 0.0 }
 0x142   :  { %v492_v49 = vpop.f32.mrf.mxu0  ;;  %1130 = vmatprep.mubr.f32.mxu1 %v848_v47 }
 0x143   :  { %v754_v51 = vmul.f32 0.2, %v489_v46  ;;  %v493_v52 = vadd.f32 %v492_v49, %v2805_v31  ;;  %1131 = vmatmul.mubr.f32.gmra.mxu1 %v847_v50  ;;  %vm658_vm11 = vcmp.gt.f32.partialorder %v489_v46, 0.0  ;;  %v849_v58 = vsel %vm657_vm12, %v487_v44, %v753_v48 }
 0x144   :  { %v494_v53 = vpop.f32.mrf.mxu0 }
 0x145   :  { %v495_v54 = vadd.f32 %v494_v53, %v2807_v32  ;;  %v850_v55 = vsel %vm658_vm11, %v489_v46, %v754_v51  ;;  %v755_v56 = vmul.f32 0.2, %v493_v52  ;;  %vm659_vm14 = vcmp.gt.f32.partialorder %v493_v52, 0.0 }
 0x146   :  { %v498_v57 = vpop.f32.mrf.mxu0  ;;  %1135 = vmatprep.mubr.f32.mxu1 %v850_v55 }
 0x147   :  { %v756_v59 = vmul.f32 0.2, %v495_v54  ;;  %v499_v60 = vadd.f32 %v498_v57, %v2805_v31  ;;  %1136 = vmatmul.mubr.f32.gmra.mxu1 %v849_v58  ;;  %vm660_vm13 = vcmp.gt.f32.partialorder %v495_v54, 0.0  ;;  %v851_v2 = vsel %vm659_vm14, %v493_v52, %v755_v56 }
 0x148   :  { %v500_v61 = vpop.f32.mrf.mxu0 }
 0x149   :  { %v501_v62 = vadd.f32 %v500_v61, %v2807_v32  ;;  %v852_v63 = vsel %vm660_vm13, %v495_v54, %v756_v59  ;;  %v757_v0 = vmul.f32 0.2, %v499_v60  ;;  %vm661_vm0 = vcmp.gt.f32.partialorder %v499_v60, 0.0 }
 0x14a   :  { %v504_v1 = vpop.f32.mrf.mxu0  ;;  %1140 = vmatprep.mubr.f32.mxu1 %v852_v63 }
 0x14b   :  { %v758_v4 = vmul.f32 0.2, %v501_v62  ;;  %v505_v5 = vadd.f32 %v504_v1, %v2805_v31  ;;  %1141 = vmatmul.mubr.f32.gmra.mxu1 %v851_v2  ;;  %vm662_vm15 = vcmp.gt.f32.partialorder %v501_v62, 0.0  ;;  %v853_v11 = vsel %vm661_vm0, %v499_v60, %v757_v0 }
 0x14c   :  { %v506_v6 = vpop.f32.mrf.mxu0 }
 0x14d   :  { %v507_v7 = vadd.f32 %v506_v6, %v2807_v32  ;;  %v854_v8 = vsel %vm662_vm15, %v501_v62, %v758_v4  ;;  %v759_v9 = vmul.f32 0.2, %v505_v5  ;;  %vm663_vm2 = vcmp.gt.f32.partialorder %v505_v5, 0.0 }
 0x14e   :  { %v510_v10 = vpop.f32.mrf.mxu0  ;;  %1145 = vmatprep.mubr.f32.mxu1 %v854_v8 }
 0x14f   :  { %v760_v12 = vmul.f32 0.2, %v507_v7  ;;  %v511_v13 = vadd.f32 %v510_v10, %v2805_v31  ;;  %1146 = vmatmul.mubr.f32.gmra.mxu1 %v853_v11  ;;  %vm664_vm1 = vcmp.gt.f32.partialorder %v507_v7, 0.0  ;;  %v855_v19 = vsel %vm663_vm2, %v505_v5, %v759_v9 }
 0x150   :  { %v512_v14 = vpop.f32.mrf.mxu0 }
 0x151   :  { %v513_v15 = vadd.f32 %v512_v14, %v2807_v32  ;;  %v856_v16 = vsel %vm664_vm1, %v507_v7, %v760_v12  ;;  %v761_v17 = vmul.f32 0.2, %v511_v13  ;;  %vm665_vm4 = vcmp.gt.f32.partialorder %v511_v13, 0.0 }
 0x152   :  { %v516_v18 = vpop.f32.mrf.mxu0  ;;  %1150 = vmatprep.mubr.f32.mxu1 %v856_v16 }
 0x153   :  { %v762_v20 = vmul.f32 0.2, %v513_v15  ;;  %v517_v21 = vadd.f32 %v516_v18, %v2805_v31  ;;  %1151 = vmatmul.mubr.f32.gmra.mxu1 %v855_v19  ;;  %vm666_vm3 = vcmp.gt.f32.partialorder %v513_v15, 0.0  ;;  %v857_v29 = vsel %vm665_vm4, %v511_v13, %v761_v17 }
 0x154   :  { %v518_v22 = vpop.f32.mrf.mxu0 }
 0x155   :  { %v519_v23 = vadd.f32 %v518_v22, %v2807_v32  ;;  %v858_v25 = vsel %vm666_vm3, %v513_v15, %v762_v20  ;;  %v763_v27 = vmul.f32 0.2, %v517_v21  ;;  %vm667_vm6 = vcmp.gt.f32.partialorder %v517_v21, 0.0 }
 0x156   :  { %v522_v28 = vpop.f32.mrf.mxu0  ;;  %1155 = vmatprep.mubr.f32.mxu1 %v858_v25 }
 0x157   :  { %v764_v30 = vmul.f32 0.2, %v519_v23  ;;  %v523_v33 = vadd.f32 %v522_v28, %v2805_v31  ;;  %1156 = vmatmul.mubr.f32.gmra.mxu1 %v857_v29  ;;  %vm668_vm5 = vcmp.gt.f32.partialorder %v519_v23, 0.0  ;;  %v859_v39 = vsel %vm667_vm6, %v517_v21, %v763_v27 }
 0x158   :  { %v524_v34 = vpop.f32.mrf.mxu0 }
 0x159   :  { %v525_v35 = vadd.f32 %v524_v34, %v2807_v32  ;;  %v860_v36 = vsel %vm668_vm5, %v519_v23, %v764_v30  ;;  %v765_v37 = vmul.f32 0.2, %v523_v33  ;;  %vm669_vm8 = vcmp.gt.f32.partialorder %v523_v33, 0.0 }
 0x15a   :  { %v528_v38 = vpop.f32.mrf.mxu0  ;;  %1160 = vmatprep.mubr.f32.mxu1 %v860_v36 }
 0x15b   :  { %v766_v40 = vmul.f32 0.2, %v525_v35  ;;  %v529_v41 = vadd.f32 %v528_v38, %v2805_v31  ;;  %1161 = vmatmul.mubr.f32.gmra.mxu1 %v859_v39  ;;  %vm670_vm7 = vcmp.gt.f32.partialorder %v525_v35, 0.0  ;;  %v861_v47 = vsel %vm669_vm8, %v523_v33, %v765_v37 }
 0x15c   :  { %v530_v42 = vpop.f32.mrf.mxu0 }
 0x15d   :  { %v531_v43 = vadd.f32 %v530_v42, %v2807_v32  ;;  %v862_v44 = vsel %vm670_vm7, %v525_v35, %v766_v40  ;;  %v767_v45 = vmul.f32 0.2, %v529_v41  ;;  %vm671_vm10 = vcmp.gt.f32.partialorder %v529_v41, 0.0 }
 0x15e   :  { %v534_v46 = vpop.f32.mrf.mxu0  ;;  %1165 = vmatprep.mubr.f32.mxu1 %v862_v44 }
 0x15f   :  { %v768_v48 = vmul.f32 0.2, %v531_v43  ;;  %v535_v49 = vadd.f32 %v534_v46, %v2805_v31  ;;  %1166 = vmatmul.mubr.f32.gmra.mxu1 %v861_v47  ;;  %vm672_vm9 = vcmp.gt.f32.partialorder %v531_v43, 0.0  ;;  %v863_v55 = vsel %vm671_vm10, %v529_v41, %v767_v45 }
 0x160   :  { %v536_v50 = vpop.f32.mrf.mxu0 }
 0x161   :  { %v537_v51 = vadd.f32 %v536_v50, %v2807_v32  ;;  %v864_v52 = vsel %vm672_vm9, %v531_v43, %v768_v48  ;;  %v769_v53 = vmul.f32 0.2, %v535_v49  ;;  %vm673_vm12 = vcmp.gt.f32.partialorder %v535_v49, 0.0 }
 0x162   :  { %v540_v54 = vpop.f32.mrf.mxu0  ;;  %1170 = vmatprep.mubr.f32.mxu1 %v864_v52 }
 0x163   :  { %v770_v56 = vmul.f32 0.2, %v537_v51  ;;  %v541_v57 = vadd.f32 %v540_v54, %v2805_v31  ;;  %1171 = vmatmul.mubr.f32.gmra.mxu1 %v863_v55  ;;  %vm674_vm11 = vcmp.gt.f32.partialorder %v537_v51, 0.0  ;;  %v865_v63 = vsel %vm673_vm12, %v535_v49, %v769_v53 }
 0x164   :  { %v542_v58 = vpop.f32.mrf.mxu0 }
 0x165   :  { %v543_v59 = vadd.f32 %v542_v58, %v2807_v32  ;;  %v866_v60 = vsel %vm674_vm11, %v537_v51, %v770_v56  ;;  %v771_v61 = vmul.f32 0.2, %v541_v57  ;;  %vm675_vm14 = vcmp.gt.f32.partialorder %v541_v57, 0.0 }
 0x166   :  { %v546_v62 = vpop.f32.mrf.mxu0  ;;  %1175 = vmatprep.mubr.f32.mxu1 %v866_v60 }
 0x167   :  { %v772_v0 = vmul.f32 0.2, %v543_v59  ;;  %v547_v1 = vadd.f32 %v546_v62, %v2805_v31  ;;  %1176 = vmatmul.mubr.f32.gmra.mxu1 %v865_v63  ;;  %vm676_vm13 = vcmp.gt.f32.partialorder %v543_v59, 0.0  ;;  %v867_v8 = vsel %vm675_vm14, %v541_v57, %v771_v61 }
 0x168   :  { %v548_v2 = vpop.f32.mrf.mxu0 }
 0x169   :  { %v549_v4 = vadd.f32 %v548_v2, %v2807_v32  ;;  %v868_v5 = vsel %vm676_vm13, %v543_v59, %v772_v0  ;;  %v773_v6 = vmul.f32 0.2, %v547_v1  ;;  %vm677_vm0 = vcmp.gt.f32.partialorder %v547_v1, 0.0 }
 0x16a   :  { %v552_v7 = vpop.f32.mrf.mxu0  ;;  %1180 = vmatprep.mubr.f32.mxu1 %v868_v5 }
 0x16b   :  { %v774_v9 = vmul.f32 0.2, %v549_v4  ;;  %v553_v10 = vadd.f32 %v552_v7, %v2805_v31  ;;  %1181 = vmatmul.mubr.f32.gmra.mxu1 %v867_v8  ;;  %vm678_vm15 = vcmp.gt.f32.partialorder %v549_v4, 0.0  ;;  %v869_v16 = vsel %vm677_vm0, %v547_v1, %v773_v6 }
 0x16c   :  { %v554_v11 = vpop.f32.mrf.mxu0 }
 0x16d   :  { %v555_v12 = vadd.f32 %v554_v11, %v2807_v32  ;;  %v870_v13 = vsel %vm678_vm15, %v549_v4, %v774_v9  ;;  %v775_v14 = vmul.f32 0.2, %v553_v10  ;;  %vm679_vm2 = vcmp.gt.f32.partialorder %v553_v10, 0.0 }
 0x16e   :  { %v558_v15 = vpop.f32.mrf.mxu0  ;;  %1185 = vmatprep.mubr.f32.mxu1 %v870_v13 }
 0x16f   :  { %v776_v17 = vmul.f32 0.2, %v555_v12  ;;  %v559_v18 = vadd.f32 %v558_v15, %v2805_v31  ;;  %1186 = vmatmul.mubr.f32.gmra.mxu1 %v869_v16  ;;  %vm680_vm1 = vcmp.gt.f32.partialorder %v555_v12, 0.0  ;;  %v871_v25 = vsel %vm679_vm2, %v553_v10, %v775_v14 }
 0x170   :  { %v560_v19 = vpop.f32.mrf.mxu0 }
 0x171   :  { %v561_v20 = vadd.f32 %v560_v19, %v2807_v32  ;;  %v872_v21 = vsel %vm680_vm1, %v555_v12, %v776_v17  ;;  %v777_v22 = vmul.f32 0.2, %v559_v18  ;;  %vm681_vm4 = vcmp.gt.f32.partialorder %v559_v18, 0.0 }
 0x172   :  { %v564_v23 = vpop.f32.mrf.mxu0  ;;  %1190 = vmatprep.mubr.f32.mxu1 %v872_v21 }
 0x173   :  { %v778_v27 = vmul.f32 0.2, %v561_v20  ;;  %v565_v28 = vadd.f32 %v564_v23, %v2805_v31  ;;  %1191 = vmatmul.mubr.f32.gmra.mxu1 %v871_v25  ;;  %vm682_vm3 = vcmp.gt.f32.partialorder %v561_v20, 0.0  ;;  %v873_v36 = vsel %vm681_vm4, %v559_v18, %v777_v22 }
 0x174   :  { %v566_v29 = vpop.f32.mrf.mxu0 }
 0x175   :  { %v567_v30 = vadd.f32 %v566_v29, %v2807_v32  ;;  %v874_v33 = vsel %vm682_vm3, %v561_v20, %v778_v27  ;;  %v779_v34 = vmul.f32 0.2, %v565_v28  ;;  %vm683_vm6 = vcmp.gt.f32.partialorder %v565_v28, 0.0 }
 0x176   :  { %v570_v35 = vpop.f32.mrf.mxu0  ;;  %1195 = vmatprep.mubr.f32.mxu1 %v874_v33 }
 0x177   :  { %v780_v37 = vmul.f32 0.2, %v567_v30  ;;  %v571_v38 = vadd.f32 %v570_v35, %v2805_v31  ;;  %1196 = vmatmul.mubr.f32.gmra.mxu1 %v873_v36  ;;  %vm684_vm5 = vcmp.gt.f32.partialorder %v567_v30, 0.0  ;;  %v875_v44 = vsel %vm683_vm6, %v565_v28, %v779_v34 }
 0x178   :  { %v572_v39 = vpop.f32.mrf.mxu0 }
 0x179   :  { %v573_v40 = vadd.f32 %v572_v39, %v2807_v32  ;;  %v876_v41 = vsel %vm684_vm5, %v567_v30, %v780_v37  ;;  %v781_v42 = vmul.f32 0.2, %v571_v38  ;;  %vm685_vm8 = vcmp.gt.f32.partialorder %v571_v38, 0.0 }
 0x17a   :  { %v576_v43 = vpop.f32.mrf.mxu0  ;;  %1200 = vmatprep.mubr.f32.mxu1 %v876_v41 }
 0x17b   :  { %v782_v45 = vmul.f32 0.2, %v573_v40  ;;  %v577_v46 = vadd.f32 %v576_v43, %v2805_v31  ;;  %1201 = vmatmul.mubr.f32.gmra.mxu1 %v875_v44  ;;  %vm686_vm7 = vcmp.gt.f32.partialorder %v573_v40, 0.0  ;;  %v877_v52 = vsel %vm685_vm8, %v571_v38, %v781_v42 }
 0x17c   :  { %v578_v47 = vpop.f32.mrf.mxu0 }
 0x17d   :  { %v579_v48 = vadd.f32 %v578_v47, %v2807_v32  ;;  %v878_v49 = vsel %vm686_vm7, %v573_v40, %v782_v45  ;;  %v783_v50 = vmul.f32 0.2, %v577_v46  ;;  %vm687_vm10 = vcmp.gt.f32.partialorder %v577_v46, 0.0 }
 0x17e   :  { %v582_v51 = vpop.f32.mrf.mxu0  ;;  %1205 = vmatprep.mubr.f32.mxu1 %v878_v49 }
 0x17f   :  { %v784_v53 = vmul.f32 0.2, %v579_v48  ;;  %v583_v54 = vadd.f32 %v582_v51, %v2805_v31  ;;  %1206 = vmatmul.mubr.f32.gmra.mxu1 %v877_v52  ;;  %vm688_vm9 = vcmp.gt.f32.partialorder %v579_v48, 0.0  ;;  %v879_v60 = vsel %vm687_vm10, %v577_v46, %v783_v50 }
 0x180   :  { %v584_v55 = vpop.f32.mrf.mxu0 }
 0x181   :  { %v585_v56 = vadd.f32 %v584_v55, %v2807_v32  ;;  %v880_v57 = vsel %vm688_vm9, %v579_v48, %v784_v53  ;;  %v785_v58 = vmul.f32 0.2, %v583_v54  ;;  %vm689_vm12 = vcmp.gt.f32.partialorder %v583_v54, 0.0 }
 0x182   :  { %v588_v59 = vpop.f32.mrf.mxu0  ;;  %1210 = vmatprep.mubr.f32.mxu1 %v880_v57 }
 0x183   :  { %v786_v61 = vmul.f32 0.2, %v585_v56  ;;  %v589_v62 = vadd.f32 %v588_v59, %v2805_v31  ;;  %1211 = vmatmul.mubr.f32.gmra.mxu1 %v879_v60  ;;  %vm690_vm11 = vcmp.gt.f32.partialorder %v585_v56, 0.0  ;;  %v881_v5 = vsel %vm689_vm12, %v583_v54, %v785_v58 }
 0x184   :  { %v590_v63 = vpop.f32.mrf.mxu0 }
 0x185   :  { %v591_v0 = vadd.f32 %v590_v63, %v2807_v32  ;;  %v882_v1 = vsel %vm690_vm11, %v585_v56, %v786_v61  ;;  %v787_v2 = vmul.f32 0.2, %v589_v62  ;;  %vm691_vm14 = vcmp.gt.f32.partialorder %v589_v62, 0.0 }
 0x186   :  { %v594_v4 = vpop.f32.mrf.mxu0  ;;  %1215 = vmatprep.mubr.f32.mxu1 %v882_v1 }
 0x187   :  { %v788_v6 = vmul.f32 0.2, %v591_v0  ;;  %v595_v7 = vadd.f32 %v594_v4, %v2805_v31  ;;  %1216 = vmatmul.mubr.f32.gmra.mxu1 %v881_v5  ;;  %vm692_vm13 = vcmp.gt.f32.partialorder %v591_v0, 0.0  ;;  %v883_v12 = vsel %vm691_vm14, %v589_v62, %v787_v2  ;;  %v2957_v31 = vld [vmem:[%s3188_s4] ss:$0 sm:$0xff] }
 0x188   :  { %v596_v8 = vpop.f32.mrf.mxu0 }
 0x189   :  { %v597_v9 = vadd.f32 %v596_v8, %v2807_v32  ;;  %v884_v10 = vsel %vm692_vm13, %v591_v0, %v788_v6  ;;  %v789_v11 = vmul.f32 0.2, %v595_v7  ;;  %vm693_vm0 = vcmp.gt.f32.partialorder %v595_v7, 0.0 }
 0x18a   :  { %1220 = vmatprep.mubr.f32.mxu1 %v884_v10 }
 0x18b   :  { %v790_v13 = vmul.f32 0.2, %v597_v9  ;;  %1221 = vmatmul.mubr.f32.gmra.mxu1 %v883_v12  ;;  %vm694_vm15 = vcmp.gt.f32.partialorder %v597_v9, 0.0  ;;  %v885_v15 = vsel %vm693_vm0, %v595_v7, %v789_v11 }
 0x18d   :  { %v886_v14 = vsel %vm694_vm15, %v597_v9, %v790_v13 }
 0x18e   :  { %1225 = vmatprep.mubr.f32.mxu1 %v886_v14 }
 0x18f   :  { %1226 = vmatmul.mubr.f32.gmra.mxu1 %v885_v15 }
 0x193   :  { %v992_v16 = vpop.f32.mrf.mxu1 }
 0x194   :  { %v993_v32 = vadd.f32 %v2957_v31, %v992_v16 }
 0x195   :  { %v994_v17 = vpop.f32.mrf.mxu1 }
 0x196   :  { %v1279_v18 = vmul.f32 0.2, %v993_v32  ;;  %vm1231_vm1 = vcmp.gt.f32.partialorder %v993_v32, 0.0 }
 0x197   :  { %v997_v19 = vpop.f32.mrf.mxu1 }
 0x198   :  { %v998_v20 = vadd.f32 %v2957_v31, %v997_v19  ;;  %v1327_v21 = vsel %vm1231_vm1, %v993_v32, %v1279_v18 }
 0x199   :  { %v999_v22 = vpop.f32.mrf.mxu1  ;;  %2236 = vmatprep.mubr.f32.mxu0 %v1327_v21 }
 0x19a   :  { %vm1232_vm2 = vcmp.gt.f32.partialorder %v998_v20, 0.0  ;;  %v1280_v23 = vmul.f32 0.2, %v998_v20 }
 0x19b   :  { %v1002_v25 = vpop.f32.mrf.mxu1 }
 0x19c   :  { %v1328_v27 = vsel %vm1232_vm2, %v998_v20, %v1280_v23  ;;  %v1003_v28 = vadd.f32 %v2957_v31, %v1002_v25 }
 0x19d   :  { %v1004_v29 = vpop.f32.mrf.mxu1  ;;  %2237 = vmatmul.mubr.f32.vlgmr.msra.gmra.mxu0 %v1328_v27 }
 0x19e   :  { %v1281_v30 = vmul.f32 0.2, %v1003_v28  ;;  %vm1233_vm3 = vcmp.gt.f32.partialorder %v1003_v28, 0.0 }
 0x19f   :  { %v1007_v33 = vpop.f32.mrf.mxu1 }
 0x1a0   :  { %v1008_v34 = vadd.f32 %v2957_v31, %v1007_v33  ;;  %v1329_v35 = vsel %vm1233_vm3, %v1003_v28, %v1281_v30 }
 0x1a1   :  { %v1009_v36 = vpop.f32.mrf.mxu1  ;;  %2239 = vmatprep.mubr.f32.mxu0 %v1329_v35 }
 0x1a2   :  { %v1282_v37 = vmul.f32 0.2, %v1008_v34  ;;  %vm1234_vm4 = vcmp.gt.f32.partialorder %v1008_v34, 0.0 }
 0x1a3   :  { %v1012_v38 = vpop.f32.mrf.mxu1 }
 0x1a4   :  { %v1013_v39 = vadd.f32 %v2957_v31, %v1012_v38  ;;  %v1330_v40 = vsel %vm1234_vm4, %v1008_v34, %v1282_v37 }
 0x1a5   :  { %v1014_v41 = vpop.f32.mrf.mxu1  ;;  %2240 = vmatmul.mubr.f32.gmra.mxu0 %v1330_v40 }
 0x1a6   :  { %v1283_v42 = vmul.f32 0.2, %v1013_v39  ;;  %vm1235_vm5 = vcmp.gt.f32.partialorder %v1013_v39, 0.0 }
 0x1a7   :  { %v1017_v43 = vpop.f32.mrf.mxu1 }
 0x1a8   :  { %v1018_v44 = vadd.f32 %v2957_v31, %v1017_v43  ;;  %v1331_v45 = vsel %vm1235_vm5, %v1013_v39, %v1283_v42 }
 0x1a9   :  { %v1019_v46 = vpop.f32.mrf.mxu1  ;;  %2242 = vmatprep.mubr.f32.mxu0 %v1331_v45 }
 0x1aa   :  { %v1284_v47 = vmul.f32 0.2, %v1018_v44  ;;  %vm1236_vm6 = vcmp.gt.f32.partialorder %v1018_v44, 0.0 }
 0x1ab   :  { %v1022_v48 = vpop.f32.mrf.mxu1 }
 0x1ac   :  { %v1023_v49 = vadd.f32 %v2957_v31, %v1022_v48  ;;  %v1332_v50 = vsel %vm1236_vm6, %v1018_v44, %v1284_v47 }
 0x1ad   :  { %v1024_v51 = vpop.f32.mrf.mxu1  ;;  %2243 = vmatmul.mubr.f32.gmra.mxu0 %v1332_v50 }
 0x1ae   :  { %v1285_v52 = vmul.f32 0.2, %v1023_v49  ;;  %vm1237_vm7 = vcmp.gt.f32.partialorder %v1023_v49, 0.0 }
 0x1af   :  { %v1027_v53 = vpop.f32.mrf.mxu1 }
 0x1b0   :  { %v1028_v54 = vadd.f32 %v2957_v31, %v1027_v53  ;;  %v1333_v55 = vsel %vm1237_vm7, %v1023_v49, %v1285_v52 }
 0x1b1   :  { %v1029_v56 = vpop.f32.mrf.mxu1  ;;  %2245 = vmatprep.mubr.f32.mxu0 %v1333_v55 }
 0x1b2   :  { %v1286_v57 = vmul.f32 0.2, %v1028_v54  ;;  %vm1238_vm8 = vcmp.gt.f32.partialorder %v1028_v54, 0.0 }
 0x1b3   :  { %v1032_v58 = vpop.f32.mrf.mxu1 }
 0x1b4   :  { %v1033_v59 = vadd.f32 %v2957_v31, %v1032_v58  ;;  %v1334_v60 = vsel %vm1238_vm8, %v1028_v54, %v1286_v57 }
 0x1b5   :  { %v1034_v61 = vpop.f32.mrf.mxu1  ;;  %2246 = vmatmul.mubr.f32.gmra.mxu0 %v1334_v60 }
 0x1b6   :  { %v1287_v62 = vmul.f32 0.2, %v1033_v59  ;;  %vm1239_vm9 = vcmp.gt.f32.partialorder %v1033_v59, 0.0 }
 0x1b7   :  { %v1037_v63 = vpop.f32.mrf.mxu1 }
 0x1b8   :  { %v1038_v0 = vadd.f32 %v2957_v31, %v1037_v63  ;;  %v1335_v1 = vsel %vm1239_vm9, %v1033_v59, %v1287_v62 }
 0x1b9   :  { %v1039_v2 = vpop.f32.mrf.mxu1  ;;  %2248 = vmatprep.mubr.f32.mxu0 %v1335_v1 }
 0x1ba   :  { %v1288_v4 = vmul.f32 0.2, %v1038_v0  ;;  %vm1240_vm10 = vcmp.gt.f32.partialorder %v1038_v0, 0.0 }
 0x1bb   :  { %v1042_v5 = vpop.f32.mrf.mxu1 }
 0x1bc   :  { %v1043_v6 = vadd.f32 %v2957_v31, %v1042_v5  ;;  %v1336_v7 = vsel %vm1240_vm10, %v1038_v0, %v1288_v4 }
 0x1bd   :  { %v1044_v8 = vpop.f32.mrf.mxu1  ;;  %2249 = vmatmul.mubr.f32.gmra.mxu0 %v1336_v7 }
 0x1be   :  { %v1289_v9 = vmul.f32 0.2, %v1043_v6  ;;  %vm1241_vm11 = vcmp.gt.f32.partialorder %v1043_v6, 0.0 }
 0x1bf   :  { %v1047_v10 = vpop.f32.mrf.mxu1 }
 0x1c0   :  { %v1048_v11 = vadd.f32 %v2957_v31, %v1047_v10  ;;  %v1337_v12 = vsel %vm1241_vm11, %v1043_v6, %v1289_v9 }
 0x1c1   :  { %v1049_v13 = vpop.f32.mrf.mxu1  ;;  %2251 = vmatprep.mubr.f32.mxu0 %v1337_v12 }
 0x1c2   :  { %v1290_v14 = vmul.f32 0.2, %v1048_v11  ;;  %vm1242_vm12 = vcmp.gt.f32.partialorder %v1048_v11, 0.0 }
 0x1c3   :  { %v1052_v15 = vpop.f32.mrf.mxu1 }
 0x1c4   :  { %v1053_v16 = vadd.f32 %v2957_v31, %v1052_v15  ;;  %v1338_v32 = vsel %vm1242_vm12, %v1048_v11, %v1290_v14 }
 0x1c5   :  { %v1054_v17 = vpop.f32.mrf.mxu1  ;;  %2252 = vmatmul.mubr.f32.gmra.mxu0 %v1338_v32 }
 0x1c6   :  { %v1291_v18 = vmul.f32 0.2, %v1053_v16  ;;  %vm1243_vm13 = vcmp.gt.f32.partialorder %v1053_v16, 0.0 }
 0x1c7   :  { %v1057_v19 = vpop.f32.mrf.mxu1 }
 0x1c8   :  { %v1058_v20 = vadd.f32 %v2957_v31, %v1057_v19  ;;  %v1339_v21 = vsel %vm1243_vm13, %v1053_v16, %v1291_v18 }
 0x1c9   :  { %v1059_v22 = vpop.f32.mrf.mxu1  ;;  %2254 = vmatprep.mubr.f32.mxu0 %v1339_v21 }
 0x1ca   :  { %v1292_v23 = vmul.f32 0.2, %v1058_v20  ;;  %vm1244_vm14 = vcmp.gt.f32.partialorder %v1058_v20, 0.0 }
 0x1cb   :  { %v1062_v25 = vpop.f32.mrf.mxu1 }
 0x1cc   :  { %v1063_v27 = vadd.f32 %v2957_v31, %v1062_v25  ;;  %v1340_v28 = vsel %vm1244_vm14, %v1058_v20, %v1292_v23 }
 0x1cd   :  { %v1064_v29 = vpop.f32.mrf.mxu1  ;;  %2255 = vmatmul.mubr.f32.gmra.mxu0 %v1340_v28 }
 0x1ce   :  { %v1293_v30 = vmul.f32 0.2, %v1063_v27  ;;  %vm1245_vm15 = vcmp.gt.f32.partialorder %v1063_v27, 0.0 }
 0x1cf   :  { %v1067_v33 = vpop.f32.mrf.mxu1 }
 0x1d0   :  { %v1068_v34 = vadd.f32 %v2957_v31, %v1067_v33  ;;  %v1341_v35 = vsel %vm1245_vm15, %v1063_v27, %v1293_v30 }
 0x1d1   :  { %v1069_v36 = vpop.f32.mrf.mxu1  ;;  %2257 = vmatprep.mubr.f32.mxu0 %v1341_v35 }
 0x1d2   :  { %v1294_v37 = vmul.f32 0.2, %v1068_v34  ;;  %vm1246_vm0 = vcmp.gt.f32.partialorder %v1068_v34, 0.0 }
 0x1d3   :  { %v1072_v38 = vpop.f32.mrf.mxu1 }
 0x1d4   :  { %v1073_v39 = vadd.f32 %v2957_v31, %v1072_v38  ;;  %v1342_v40 = vsel %vm1246_vm0, %v1068_v34, %v1294_v37 }
 0x1d5   :  { %v1074_v41 = vpop.f32.mrf.mxu1  ;;  %2258 = vmatmul.mubr.f32.gmra.mxu0 %v1342_v40 }
 0x1d6   :  { %v1295_v42 = vmul.f32 0.2, %v1073_v39  ;;  %vm1247_vm1 = vcmp.gt.f32.partialorder %v1073_v39, 0.0 }
 0x1d7   :  { %v1077_v43 = vpop.f32.mrf.mxu1 }
 0x1d8   :  { %v1078_v44 = vadd.f32 %v2957_v31, %v1077_v43  ;;  %v1343_v45 = vsel %vm1247_vm1, %v1073_v39, %v1295_v42 }
 0x1d9   :  { %v1079_v46 = vpop.f32.mrf.mxu1  ;;  %2260 = vmatprep.mubr.f32.mxu0 %v1343_v45 }
 0x1da   :  { %vm1248_vm2 = vcmp.gt.f32.partialorder %v1078_v44, 0.0  ;;  %v1296_v47 = vmul.f32 0.2, %v1078_v44 }
 0x1db   :  { %v1082_v48 = vpop.f32.mrf.mxu1 }
 0x1dc   :  { %v1083_v49 = vadd.f32 %v2957_v31, %v1082_v48  ;;  %v1344_v50 = vsel %vm1248_vm2, %v1078_v44, %v1296_v47 }
 0x1dd   :  { %v1084_v51 = vpop.f32.mrf.mxu1  ;;  %2261 = vmatmul.mubr.f32.gmra.mxu0 %v1344_v50 }
 0x1de   :  { %v1297_v52 = vmul.f32 0.2, %v1083_v49  ;;  %vm1249_vm3 = vcmp.gt.f32.partialorder %v1083_v49, 0.0 }
 0x1df   :  { %v1087_v53 = vpop.f32.mrf.mxu1 }
 0x1e0   :  { %v1088_v54 = vadd.f32 %v2957_v31, %v1087_v53  ;;  %v1345_v55 = vsel %vm1249_vm3, %v1083_v49, %v1297_v52 }
 0x1e1   :  { %v1089_v56 = vpop.f32.mrf.mxu1  ;;  %2263 = vmatprep.mubr.f32.mxu0 %v1345_v55 }
 0x1e2   :  { %vm1250_vm4 = vcmp.gt.f32.partialorder %v1088_v54, 0.0  ;;  %v1298_v57 = vmul.f32 0.2, %v1088_v54 }
 0x1e3   :  { %v1092_v58 = vpop.f32.mrf.mxu1 }
 0x1e4   :  { %v1093_v59 = vadd.f32 %v2957_v31, %v1092_v58  ;;  %v1346_v60 = vsel %vm1250_vm4, %v1088_v54, %v1298_v57 }
 0x1e5   :  { %v1094_v61 = vpop.f32.mrf.mxu1  ;;  %2264 = vmatmul.mubr.f32.gmra.mxu0 %v1346_v60 }
 0x1e6   :  { %v1299_v62 = vmul.f32 0.2, %v1093_v59  ;;  %vm1251_vm5 = vcmp.gt.f32.partialorder %v1093_v59, 0.0 }
 0x1e7   :  { %v1097_v63 = vpop.f32.mrf.mxu1 }
 0x1e8   :  { %v1098_v0 = vadd.f32 %v2957_v31, %v1097_v63  ;;  %v1347_v1 = vsel %vm1251_vm5, %v1093_v59, %v1299_v62 }
 0x1e9   :  { %v1099_v2 = vpop.f32.mrf.mxu1  ;;  %2266 = vmatprep.mubr.f32.mxu0 %v1347_v1 }
 0x1ea   :  { %vm1252_vm6 = vcmp.gt.f32.partialorder %v1098_v0, 0.0  ;;  %v1300_v4 = vmul.f32 0.2, %v1098_v0 }
 0x1eb   :  { %v1102_v5 = vpop.f32.mrf.mxu1 }
 0x1ec   :  { %v1103_v6 = vadd.f32 %v2957_v31, %v1102_v5  ;;  %v1348_v7 = vsel %vm1252_vm6, %v1098_v0, %v1300_v4 }
 0x1ed   :  { %v1104_v8 = vpop.f32.mrf.mxu1  ;;  %2267 = vmatmul.mubr.f32.gmra.mxu0 %v1348_v7 }
 0x1ee   :  { %v1301_v9 = vmul.f32 0.2, %v1103_v6  ;;  %vm1253_vm7 = vcmp.gt.f32.partialorder %v1103_v6, 0.0 }
 0x1ef   :  { %v1107_v10 = vpop.f32.mrf.mxu1 }
 0x1f0   :  { %v1108_v11 = vadd.f32 %v2957_v31, %v1107_v10  ;;  %v1349_v12 = vsel %vm1253_vm7, %v1103_v6, %v1301_v9 }
 0x1f1   :  { %v1109_v13 = vpop.f32.mrf.mxu1  ;;  %2269 = vmatprep.mubr.f32.mxu0 %v1349_v12 }
 0x1f2   :  { %vm1254_vm8 = vcmp.gt.f32.partialorder %v1108_v11, 0.0  ;;  %v1302_v14 = vmul.f32 0.2, %v1108_v11 }
 0x1f3   :  { %v1112_v15 = vpop.f32.mrf.mxu1 }
 0x1f4   :  { %v1113_v16 = vadd.f32 %v2957_v31, %v1112_v15  ;;  %v1350_v32 = vsel %vm1254_vm8, %v1108_v11, %v1302_v14 }
 0x1f5   :  { %v1114_v17 = vpop.f32.mrf.mxu1  ;;  %2270 = vmatmul.mubr.f32.gmra.mxu0 %v1350_v32 }
 0x1f6   :  { %v1303_v18 = vmul.f32 0.2, %v1113_v16  ;;  %vm1255_vm9 = vcmp.gt.f32.partialorder %v1113_v16, 0.0 }
 0x1f7   :  { %v1117_v19 = vpop.f32.mrf.mxu1 }
 0x1f8   :  { %v1118_v20 = vadd.f32 %v2957_v31, %v1117_v19  ;;  %v1351_v21 = vsel %vm1255_vm9, %v1113_v16, %v1303_v18 }
 0x1f9   :  { %v1119_v22 = vpop.f32.mrf.mxu1  ;;  %2272 = vmatprep.mubr.f32.mxu0 %v1351_v21 }
 0x1fa   :  { %vm1256_vm10 = vcmp.gt.f32.partialorder %v1118_v20, 0.0  ;;  %v1304_v23 = vmul.f32 0.2, %v1118_v20 }
 0x1fb   :  { %v1122_v25 = vpop.f32.mrf.mxu1 }
 0x1fc   :  { %v1123_v27 = vadd.f32 %v2957_v31, %v1122_v25  ;;  %v1352_v28 = vsel %vm1256_vm10, %v1118_v20, %v1304_v23 }
 0x1fd   :  { %v1124_v29 = vpop.f32.mrf.mxu1  ;;  %2273 = vmatmul.mubr.f32.gmra.mxu0 %v1352_v28 }
 0x1fe   :  { %v1305_v30 = vmul.f32 0.2, %v1123_v27  ;;  %vm1257_vm11 = vcmp.gt.f32.partialorder %v1123_v27, 0.0 }
 0x1ff   :  { %v1127_v33 = vpop.f32.mrf.mxu1 }
 0x200   :  { %v1128_v34 = vadd.f32 %v2957_v31, %v1127_v33  ;;  %v1353_v35 = vsel %vm1257_vm11, %v1123_v27, %v1305_v30 }
 0x201   :  { %v1129_v36 = vpop.f32.mrf.mxu1  ;;  %2275 = vmatprep.mubr.f32.mxu0 %v1353_v35 }
 0x202   :  { %vm1258_vm12 = vcmp.gt.f32.partialorder %v1128_v34, 0.0  ;;  %v1306_v37 = vmul.f32 0.2, %v1128_v34 }
 0x203   :  { %v1132_v38 = vpop.f32.mrf.mxu1 }
 0x204   :  { %v1133_v39 = vadd.f32 %v2957_v31, %v1132_v38  ;;  %v1354_v40 = vsel %vm1258_vm12, %v1128_v34, %v1306_v37 }
 0x205   :  { %v1134_v41 = vpop.f32.mrf.mxu1  ;;  %2276 = vmatmul.mubr.f32.gmra.mxu0 %v1354_v40 }
 0x206   :  { %v1307_v42 = vmul.f32 0.2, %v1133_v39  ;;  %vm1259_vm13 = vcmp.gt.f32.partialorder %v1133_v39, 0.0 }
 0x207   :  { %v1137_v43 = vpop.f32.mrf.mxu1 }
 0x208   :  { %v1138_v44 = vadd.f32 %v2957_v31, %v1137_v43  ;;  %v1355_v45 = vsel %vm1259_vm13, %v1133_v39, %v1307_v42 }
 0x209   :  { %v1139_v46 = vpop.f32.mrf.mxu1  ;;  %2278 = vmatprep.mubr.f32.mxu0 %v1355_v45 }
 0x20a   :  { %vm1260_vm14 = vcmp.gt.f32.partialorder %v1138_v44, 0.0  ;;  %v1308_v47 = vmul.f32 0.2, %v1138_v44 }
 0x20b   :  { %v1142_v48 = vpop.f32.mrf.mxu1 }
 0x20c   :  { %v1143_v49 = vadd.f32 %v2957_v31, %v1142_v48  ;;  %v1356_v50 = vsel %vm1260_vm14, %v1138_v44, %v1308_v47 }
 0x20d   :  { %v1144_v51 = vpop.f32.mrf.mxu1  ;;  %2279 = vmatmul.mubr.f32.gmra.mxu0 %v1356_v50 }
 0x20e   :  { %v1309_v52 = vmul.f32 0.2, %v1143_v49  ;;  %vm1261_vm15 = vcmp.gt.f32.partialorder %v1143_v49, 0.0 }
 0x20f   :  { %v1147_v53 = vpop.f32.mrf.mxu1 }
 0x210   :  { %v1148_v54 = vadd.f32 %v2957_v31, %v1147_v53  ;;  %v1357_v55 = vsel %vm1261_vm15, %v1143_v49, %v1309_v52 }
 0x211   :  { %v1149_v56 = vpop.f32.mrf.mxu1  ;;  %2281 = vmatprep.mubr.f32.mxu0 %v1357_v55 }
 0x212   :  { %vm1262_vm0 = vcmp.gt.f32.partialorder %v1148_v54, 0.0  ;;  %v1310_v57 = vmul.f32 0.2, %v1148_v54 }
 0x213   :  { %v1152_v58 = vpop.f32.mrf.mxu1 }
 0x214   :  { %v1153_v59 = vadd.f32 %v2957_v31, %v1152_v58  ;;  %v1358_v60 = vsel %vm1262_vm0, %v1148_v54, %v1310_v57 }
 0x215   :  { %v1154_v61 = vpop.f32.mrf.mxu1  ;;  %2282 = vmatmul.mubr.f32.gmra.mxu0 %v1358_v60 }
 0x216   :  { %v1311_v62 = vmul.f32 0.2, %v1153_v59  ;;  %vm1263_vm1 = vcmp.gt.f32.partialorder %v1153_v59, 0.0 }
 0x217   :  { %v1157_v63 = vpop.f32.mrf.mxu1 }
 0x218   :  { %v1158_v0 = vadd.f32 %v2957_v31, %v1157_v63  ;;  %v1359_v1 = vsel %vm1263_vm1, %v1153_v59, %v1311_v62 }
 0x219   :  { %v1159_v2 = vpop.f32.mrf.mxu1  ;;  %2284 = vmatprep.mubr.f32.mxu0 %v1359_v1 }
 0x21a   :  { %vm1264_vm2 = vcmp.gt.f32.partialorder %v1158_v0, 0.0  ;;  %v1312_v4 = vmul.f32 0.2, %v1158_v0 }
 0x21b   :  { %v1162_v5 = vpop.f32.mrf.mxu1 }
 0x21c   :  { %v1163_v6 = vadd.f32 %v2957_v31, %v1162_v5  ;;  %v1360_v7 = vsel %vm1264_vm2, %v1158_v0, %v1312_v4 }
 0x21d   :  { %v1164_v8 = vpop.f32.mrf.mxu1  ;;  %2285 = vmatmul.mubr.f32.gmra.mxu0 %v1360_v7 }
 0x21e   :  { %v1313_v9 = vmul.f32 0.2, %v1163_v6  ;;  %vm1265_vm3 = vcmp.gt.f32.partialorder %v1163_v6, 0.0 }
 0x21f   :  { %v1167_v10 = vpop.f32.mrf.mxu1 }
 0x220   :  { %v1168_v11 = vadd.f32 %v2957_v31, %v1167_v10  ;;  %v1361_v12 = vsel %vm1265_vm3, %v1163_v6, %v1313_v9  ;;  %vm2353_vm3 = vmmov 0  }
 0x221   :  { %v1169_v13 = vpop.f32.mrf.mxu1  ;;  %2287 = vmatprep.mubr.f32.mxu0 %v1361_v12 }
 0x222   :  { %vm1266_vm4 = vcmp.gt.f32.partialorder %v1168_v11, 0.0  ;;  %v1314_v14 = vmul.f32 0.2, %v1168_v11 }
 0x223   :  { %v1172_v15 = vpop.f32.mrf.mxu1 }
 0x224   :  { %v1173_v16 = vadd.f32 %v2957_v31, %v1172_v15  ;;  %v1362_v32 = vsel %vm1266_vm4, %v1168_v11, %v1314_v14 }
 0x225   :  { %v1174_v17 = vpop.f32.mrf.mxu1  ;;  %2288 = vmatmul.mubr.f32.gmra.mxu0 %v1362_v32 }
 0x226   :  { %v1315_v18 = vmul.f32 0.2, %v1173_v16  ;;  %vm1267_vm5 = vcmp.gt.f32.partialorder %v1173_v16, 0.0 }
 0x227   :  { %v1177_v19 = vpop.f32.mrf.mxu1 }
 0x228   :  { %v1178_v20 = vadd.f32 %v2957_v31, %v1177_v19  ;;  %v1363_v21 = vsel %vm1267_vm5, %v1173_v16, %v1315_v18 }
 0x229   :  { %v1179_v22 = vpop.f32.mrf.mxu1  ;;  %2290 = vmatprep.mubr.f32.mxu0 %v1363_v21 }
 0x22a   :  { %vm1268_vm6 = vcmp.gt.f32.partialorder %v1178_v20, 0.0  ;;  %v1316_v23 = vmul.f32 0.2, %v1178_v20 }
 0x22b   :  { %v1182_v25 = vpop.f32.mrf.mxu1 }
 0x22c   :  { %v1183_v27 = vadd.f32 %v2957_v31, %v1182_v25  ;;  %v1364_v28 = vsel %vm1268_vm6, %v1178_v20, %v1316_v23 }
 0x22d   :  { %v1184_v29 = vpop.f32.mrf.mxu1  ;;  %2291 = vmatmul.mubr.f32.gmra.mxu0 %v1364_v28 }
 0x22e   :  { %v1317_v30 = vmul.f32 0.2, %v1183_v27  ;;  %vm1269_vm7 = vcmp.gt.f32.partialorder %v1183_v27, 0.0 }
 0x22f   :  { %v1187_v33 = vpop.f32.mrf.mxu1 }
 0x230   :  { %v1188_v34 = vadd.f32 %v2957_v31, %v1187_v33  ;;  %v1365_v35 = vsel %vm1269_vm7, %v1183_v27, %v1317_v30 }
 0x231   :  { %v1189_v36 = vpop.f32.mrf.mxu1  ;;  %2293 = vmatprep.mubr.f32.mxu0 %v1365_v35 }
 0x232   :  { %vm1270_vm8 = vcmp.gt.f32.partialorder %v1188_v34, 0.0  ;;  %v1318_v37 = vmul.f32 0.2, %v1188_v34 }
 0x233   :  { %v1192_v38 = vpop.f32.mrf.mxu1 }
 0x234   :  { %v1193_v39 = vadd.f32 %v2957_v31, %v1192_v38  ;;  %v1366_v40 = vsel %vm1270_vm8, %v1188_v34, %v1318_v37 }
 0x235   :  { %v1194_v41 = vpop.f32.mrf.mxu1  ;;  %2294 = vmatmul.mubr.f32.gmra.mxu0 %v1366_v40 }
 0x236   :  { %v1319_v42 = vmul.f32 0.2, %v1193_v39  ;;  %vm1271_vm9 = vcmp.gt.f32.partialorder %v1193_v39, 0.0 }
 0x237   :  { %v1197_v43 = vpop.f32.mrf.mxu1 }
 0x238   :  { %v1198_v44 = vadd.f32 %v2957_v31, %v1197_v43  ;;  %v1367_v45 = vsel %vm1271_vm9, %v1193_v39, %v1319_v42 }
 0x239   :  { %v1199_v46 = vpop.f32.mrf.mxu1  ;;  %2296 = vmatprep.mubr.f32.mxu0 %v1367_v45 }
 0x23a   :  { %vm1272_vm10 = vcmp.gt.f32.partialorder %v1198_v44, 0.0  ;;  %v1320_v47 = vmul.f32 0.2, %v1198_v44 }
 0x23b   :  { %v1202_v48 = vpop.f32.mrf.mxu1 }
 0x23c   :  { %v1203_v49 = vadd.f32 %v2957_v31, %v1202_v48  ;;  %v1368_v50 = vsel %vm1272_vm10, %v1198_v44, %v1320_v47  ;;  %v3050_v47 = vld [vmem:[%s3189_s6] ss:$0 sm:$0xff] }
 0x23d   :  { %v1204_v51 = vpop.f32.mrf.mxu1  ;;  %2297 = vmatmul.mubr.f32.gmra.mxu0 %v1368_v50  ;;  %v3055_v48 = vld [vmem:[%s3190_s7] sm:$0x1] }
 0x23e   :  { %v1321_v52 = vmul.f32 0.2, %v1203_v49  ;;  %vm1273_vm11 = vcmp.gt.f32.partialorder %v1203_v49, 0.0  ;;  %2185 = vmatprep.mubr.f32.mxu1 %v3055_v48 }
 0x23f   :  { %v1207_v53 = vpop.f32.mrf.mxu1 }
 0x240   :  { %v1208_v54 = vadd.f32 %v2957_v31, %v1207_v53  ;;  %v1369_v55 = vsel %vm1273_vm11, %v1203_v49, %v1321_v52 }
 0x241   :  { %v1209_v56 = vpop.f32.mrf.mxu1  ;;  %2299 = vmatprep.mubr.f32.mxu0 %v1369_v55 }
 0x242   :  { %vm1274_vm12 = vcmp.gt.f32.partialorder %v1208_v54, 0.0  ;;  %v1322_v57 = vmul.f32 0.2, %v1208_v54 }
 0x243   :  { %v1212_v58 = vpop.f32.mrf.mxu1 }
 0x244   :  { %v1213_v59 = vadd.f32 %v2957_v31, %v1212_v58  ;;  %v1370_v60 = vsel %vm1274_vm12, %v1208_v54, %v1322_v57 }
 0x245   :  { %v1214_v61 = vpop.f32.mrf.mxu1  ;;  %2300 = vmatmul.mubr.f32.gmra.mxu0 %v1370_v60 }
 0x246   :  { %v1323_v62 = vmul.f32 0.2, %v1213_v59  ;;  %vm1275_vm13 = vcmp.gt.f32.partialorder %v1213_v59, 0.0 }
 0x247   :  { %v1217_v63 = vpop.f32.mrf.mxu1 }
 0x248   :  { %v1218_v0 = vadd.f32 %v2957_v31, %v1217_v63  ;;  %v1371_v1 = vsel %vm1275_vm13, %v1213_v59, %v1323_v62 }
 0x249   :  { %v1219_v2 = vpop.f32.mrf.mxu1  ;;  %2302 = vmatprep.mubr.f32.mxu0 %v1371_v1 }
 0x24a   :  { %vm1276_vm14 = vcmp.gt.f32.partialorder %v1218_v0, 0.0  ;;  %v1324_v4 = vmul.f32 0.2, %v1218_v0 }
 0x24b   :  { %v1222_v5 = vpop.f32.mrf.mxu1 }
 0x24c   :  { %v1223_v6 = vadd.f32 %v2957_v31, %v1222_v5  ;;  %v1372_v7 = vsel %vm1276_vm14, %v1218_v0, %v1324_v4 }
 0x24d   :  { %v1224_v8 = vpop.f32.mrf.mxu1  ;;  %2303 = vmatmul.mubr.f32.gmra.mxu0 %v1372_v7 }
 0x24e   :  { %v1325_v9 = vmul.f32 0.2, %v1223_v6  ;;  %vm1277_vm15 = vcmp.gt.f32.partialorder %v1223_v6, 0.0 }
 0x24f   :  { %v1227_v10 = vpop.f32.mrf.mxu1 }
 0x250   :  { %v1228_v11 = vadd.f32 %v2957_v31, %v1227_v10  ;;  %v1373_v12 = vsel %vm1277_vm15, %v1223_v6, %v1325_v9 }
 0x251   :  { %2305 = vmatprep.mubr.f32.mxu0 %v1373_v12  ;;  %v1229_v13 = vpop.f32.mrf.mxu1 }
 0x252   :  { %vm1278_vm0 = vcmp.gt.f32.partialorder %v1228_v11, 0.0  ;;  %v1326_v14 = vmul.f32 0.2, %v1228_v11 }
 0x254   :  { %v1374_v15 = vsel %vm1278_vm0, %v1228_v11, %v1326_v14 }
 0x255   :  { %2306 = vmatmul.mubr.f32.gmra.mxu0 %v1374_v15 }
 0x256   :  { %2340 = vmatprep.mubr.msk.f32.mxu0 %vm2353_vm3, %v2352_v3 }
 0x25d   :  { %v3007_v16 = vpop.f32.mrf.mxu0 }
 0x25f   :  { %v3009_v32 = vpop.f32.mrf.mxu0 }
 0x265   :  { %v3011_v17 = vpop.f32.mrf.mxu0 }
 0x267   :  { %v3013_v18 = vpop.f32.mrf.mxu0 }
 0x26d   :  { %v3015_v19 = vpop.f32.mrf.mxu0 }
 0x26f   :  { %v3017_v20 = vpop.f32.mrf.mxu0 }
 0x275   :  { %v3019_v31 = vpop.f32.mrf.mxu0 }
 0x277   :  { %v3021_v21 = vpop.f32.mrf.mxu0 }
 0x27d   :  { %v3023_v22 = vpop.f32.mrf.mxu0 }
 0x27f   :  { %v3025_v23 = vpop.f32.mrf.mxu0 }
 0x285   :  { %v2253_v25 = vpop.f32.mrf.mxu0 }
 0x286   :  { %v1520_v10 = vadd.f32 %v2253_v25, %v3050_v47 }
 0x287   :  { %v3027_v27 = vpop.f32.mrf.mxu0 }
 0x288   :  { %vm1714_vm11 = vcmp.gt.f32.partialorder %v1520_v10, 0.0 }
 0x28d   :  { %v2256_v28 = vpop.f32.mrf.mxu0 }
 0x28e   :  { %v1530_v61 = vadd.f32 %v2256_v28, %v3050_v47  ;;  %v1762_v28 = vmul.f32 0.2, %v1520_v10 }
 0x28f   :  { %v1524_v29 = vpop.f32.mrf.mxu0 }
 0x290   :  { %v1764_v4 = vmul.f32 0.2, %v1530_v61  ;;  %v1525_v5 = vadd.f32 %v3050_v47, %v1524_v29  ;;  %vm1716_vm7 = vcmp.gt.f32.partialorder %v1530_v61, 0.0  ;;  %v1515_v29 = vadd.f32 %v3050_v47, %v3027_v27 }
 0x292   :  { %v1763_v11 = vmul.f32 0.2, %v1525_v5  ;;  %v1812_v12 = vsel %vm1716_vm7, %v1530_v61, %v1764_v4  ;;  %vm1715_vm9 = vcmp.gt.f32.partialorder %v1525_v5, 0.0  ;;  %vm1713_vm13 = vcmp.gt.f32.partialorder %v1515_v29, 0.0 }
 0x295   :  { %v2259_v30 = vpop.f32.mrf.mxu0 }
 0x296   :  { %v1540_v49 = vadd.f32 %v2259_v30, %v3050_v47  ;;  %v1811_v30 = vsel %vm1715_vm9, %v1525_v5, %v1763_v11  ;;  %v1490_v5 = vadd.f32 %v3015_v19, %v3050_v47 }
 0x297   :  { %v1534_v33 = vpop.f32.mrf.mxu0 }
 0x298   :  { %vm1718_vm1 = vcmp.gt.f32.partialorder %v1540_v49, 0.0  ;;  %v1766_v53 = vmul.f32 0.2, %v1540_v49  ;;  %v1535_v54 = vadd.f32 %v3050_v47, %v1534_v33  ;;  %v1756_v11 = vmul.f32 0.2, %v1490_v5 }
 0x299   :  { %vm1708_vm7 = vcmp.gt.f32.partialorder %v1490_v5, 0.0 }
 0x29a   :  { %v1765_v62 = vmul.f32 0.2, %v1535_v54  ;;  %v1814_v63 = vsel %vm1718_vm1, %v1540_v49, %v1766_v53  ;;  %vm1717_vm5 = vcmp.gt.f32.partialorder %v1535_v54, 0.0  ;;  %v1810_v49 = vsel %vm1714_vm11, %v1520_v10, %v1762_v28 }
 0x29b   :  { %v1505_v53 = vadd.f32 %v3050_v47, %v3025_v23  ;;  %v1480_v28 = vadd.f32 %v3011_v17, %v3050_v47 }
 0x29c   :  { %v1813_v6 = vsel %vm1717_vm5, %v1535_v54, %v1765_v62 }
 0x29d   :  { %v3029_v34 = vpop.f32.mrf.mxu0  ;;  %vm1711_vm1 = vcmp.gt.f32.partialorder %v1505_v53, 0.0  ;;  %vm1706_vm11 = vcmp.gt.f32.partialorder %v1480_v28, 0.0 }
 0x29e   :  { %v1550_v17 = vadd.f32 %v3029_v34, %v3050_v47 }
 0x29f   :  { %v3031_v35 = vpop.f32.mrf.mxu0 }
 0x2a5   :  { %v3033_v36 = vpop.f32.mrf.mxu0 }
 0x2a7   :  { %v3035_v37 = vpop.f32.mrf.mxu0 }
 0x2ad   :  { %v3037_v38 = vpop.f32.mrf.mxu0 }
 0x2af   :  { %v3039_v39 = vpop.f32.mrf.mxu0 }
 0x2b5   :  { %v3041_v40 = vpop.f32.mrf.mxu0 }
 0x2b7   :  { %v3043_v41 = vpop.f32.mrf.mxu0 }
 0x2b8   :  { %v1575_v61 = vadd.f32 %v3050_v47, %v3043_v41 }
 0x2ba   :  { %v1773_v4 = vmul.f32 0.2, %v1575_v61 }
 0x2bd   :  { %v2274_v42 = vpop.f32.mrf.mxu0 }
 0x2be   :  { %v1590_v33 = vadd.f32 %v2274_v42, %v3050_v47 }
 0x2bf   :  { %v3045_v43 = vpop.f32.mrf.mxu0 }
 0x2c0   :  { %v1585_v27 = vadd.f32 %v3050_v47, %v3045_v43  ;;  %vm1728_vm14 = vcmp.gt.f32.partialorder %v1590_v33, 0.0 }
 0x2c2   :  { %vm1727_vm0 = vcmp.gt.f32.partialorder %v1585_v27, 0.0 }
 0x2c5   :  { %v2277_v44 = vpop.f32.mrf.mxu0 }
 0x2c6   :  { %v1600_v7 = vadd.f32 %v2277_v44, %v3050_v47 }
 0x2c7   :  { %v1594_v45 = vpop.f32.mrf.mxu0 }
 0x2c8   :  { %v1778_v13 = vmul.f32 0.2, %v1600_v7  ;;  %v1595_v14 = vadd.f32 %v3050_v47, %v1594_v45  ;;  %vm1730_vm10 = vcmp.gt.f32.partialorder %v1600_v7, 0.0  ;;  %v1510_v45 = vadd.f32 %v3023_v22, %v3050_v47 }
 0x2c9   :  { %v1580_v22 = vadd.f32 %v3041_v40, %v3050_v47 }
 0x2ca   :  { %v1777_v44 = vmul.f32 0.2, %v1595_v14  ;;  %v1826_v25 = vsel %vm1730_vm10, %v1600_v7, %v1778_v13  ;;  %vm1729_vm12 = vcmp.gt.f32.partialorder %v1595_v14, 0.0  ;;  %v1760_v42 = vmul.f32 0.2, %v1510_v45 }
 0x2cb   :  { %vm1712_vm15 = vcmp.gt.f32.partialorder %v1510_v45, 0.0  ;;  %v1774_v23 = vmul.f32 0.2, %v1580_v22  ;;  %v1560_v13 = vadd.f32 %v3033_v36, %v3050_v47 }
 0x2cd   :  { %v2280_v46 = vpop.f32.mrf.mxu0  ;;  %vm1722_vm10 = vcmp.gt.f32.partialorder %v1560_v13, 0.0 }
 0x2ce   :  { %v1610_v56 = vadd.f32 %v2280_v46, %v3050_v47  ;;  %v1761_v46 = vmul.f32 0.2, %v1515_v29 }
 0x2cf   :  { %v1604_v50 = vpop.f32.mrf.mxu0 }
 0x2d0   :  { %v1780_v0 = vmul.f32 0.2, %v1610_v56  ;;  %v1605_v1 = vadd.f32 %v3050_v47, %v1604_v50  ;;  %vm1732_vm6 = vcmp.gt.f32.partialorder %v1610_v56, 0.0  ;;  %v1809_v54 = vsel %vm1713_vm13, %v1515_v29, %v1761_v46 }
 0x2d2   :  { %v1779_v8 = vmul.f32 0.2, %v1605_v1  ;;  %v1828_v9 = vsel %vm1732_vm6, %v1610_v56, %v1780_v0  ;;  %vm1731_vm8 = vcmp.gt.f32.partialorder %v1605_v1, 0.0  ;;  %v1775_v56 = vmul.f32 0.2, %v1585_v27 }
 0x2d3   :  { %v1495_v0 = vadd.f32 %v3050_v47, %v3021_v21 }
 0x2d4   :  { %v1827_v15 = vsel %vm1731_vm8, %v1605_v1, %v1779_v8  ;;  %v1823_v62 = vsel %vm1727_vm0, %v1585_v27, %v1775_v56 }
 0x2d5   :  { %v2283_v51 = vpop.f32.mrf.mxu0  ;;  %vm1709_vm5 = vcmp.gt.f32.partialorder %v1495_v0, 0.0 }
 0x2d6   :  { %v1620_v52 = vadd.f32 %v2283_v51, %v3050_v47  ;;  %v1776_v51 = vmul.f32 0.2, %v1590_v33 }
 0x2d7   :  { %v1614_v55 = vpop.f32.mrf.mxu0 }
 0x2d8   :  { %v1782_v57 = vmul.f32 0.2, %v1620_v52  ;;  %v1615_v58 = vadd.f32 %v3050_v47, %v1614_v55  ;;  %vm1734_vm2 = vcmp.gt.f32.partialorder %v1620_v52, 0.0 }
 0x2da   :  { %v1781_v59 = vmul.f32 0.2, %v1615_v58  ;;  %v1830_v60 = vsel %vm1734_vm2, %v1620_v52, %v1782_v57  ;;  %vm1733_vm4 = vcmp.gt.f32.partialorder %v1615_v58, 0.0  ;;  %v1825_v52 = vsel %vm1729_vm12, %v1595_v14, %v1777_v44 }
 0x2db   :  { %2153 = vmatprep.subr.mxu1 %v1830_v60  ;;  %v1824_v57 = vsel %vm1728_vm14, %v1590_v33, %v1776_v51  ;;  %v1808_v60 = vsel %vm1712_vm15, %v1510_v45, %v1760_v42  ;;  %vm1726_vm2 = vcmp.gt.f32.partialorder %v1580_v22, 0.0  ;;  %v1555_v44 = vadd.f32 %v3050_v47, %v3035_v37 }
 0x2dc   :  { %2154 = vmatpush3.xpose.msra.mxu1 %v1814_v63  ;;  %v1829_v2 = vsel %vm1733_vm4, %v1615_v58, %v1781_v59  ;;  %v1500_v58 = vadd.f32 %v3019_v31, %v3050_v47  ;;  %v1759_v59 = vmul.f32 0.2, %v1505_v53  ;;  %v1570_v31 = vadd.f32 %v3037_v38, %v3050_v47 }
 0x2dd   :  { %2155 = vmatprep.subr.mxu1 %v1829_v2  ;;  %v3076_v50 = vpop.f32.mrf.mxu0  ;;  %v1822_v41 = vsel %vm1726_vm2, %v1580_v22, %v1774_v23  ;;  %vm1725_vm4 = vcmp.gt.f32.partialorder %v1575_v61, 0.0  ;;  %v1475_v45 = vadd.f32 %v3050_v47, %v3013_v18  ;;  %v1769_v51 = vmul.f32 0.2, %v1555_v44 }
 0x2de   :  { %v1758_v63 = vmul.f32 0.2, %v1500_v58  ;;  %v1807_v1 = vsel %vm1711_vm1, %v1505_v53, %v1759_v59  ;;  %vm1710_vm3 = vcmp.gt.f32.partialorder %v1500_v58, 0.0  ;;  %v1772_v21 = vmul.f32 0.2, %v1570_v31 }
 0x2df   :  { %v3082_v55 = vpop.f32.mrf.mxu0  ;;  %v1821_v10 = vsel %vm1725_vm4, %v1575_v61, %v1773_v4  ;;  %vm1724_vm6 = vcmp.gt.f32.partialorder %v1570_v31, 0.0  ;;  %vm1721_vm12 = vcmp.gt.f32.partialorder %v1555_v44, 0.0  ;;  %v1753_v42 = vmul.f32 0.2, %v1475_v45 }
 0x2e0   :  { %2156 = vmatpush3.xpose.msra.mxu1 %v1813_v6  ;;  %v1757_v6 = vmul.f32 0.2, %v1495_v0  ;;  %v1806_v7 = vsel %vm1710_vm3, %v1500_v58, %v1758_v63  ;;  %vm1705_vm13 = vcmp.gt.f32.partialorder %v1475_v45, 0.0  ;;  %v1768_v18 = vmul.f32 0.2, %v1550_v17 }
 0x2e1   :  { %2157 = vmatprep.subr.mxu1 %v1828_v9  ;;  %v1565_v9 = vadd.f32 %v3050_v47, %v3039_v39  ;;  %v1817_v22 = vsel %vm1721_vm12, %v1555_v44, %v1769_v51  ;;  %vm1720_vm14 = vcmp.gt.f32.partialorder %v1550_v17, 0.0  ;;  %v1801_v58 = vsel %vm1705_vm13, %v1475_v45, %v1753_v42 }
 0x2e2   :  { %v1805_v19 = vsel %vm1709_vm5, %v1495_v0, %v1757_v6 }
 0x2e3   :  { %v1771_v14 = vmul.f32 0.2, %v1565_v9  ;;  %vm1723_vm8 = vcmp.gt.f32.partialorder %v1565_v9, 0.0 }
 0x2e4   :  { %2158 = vmatpush3.xpose.msra.mxu1 %v1812_v12  ;;  %v1485_v12 = vadd.f32 %v3050_v47, %v3017_v20  ;;  %v1770_v20 = vmul.f32 0.2, %v1560_v13 }
 0x2e5   :  { %2159 = vmatprep.subr.mxu1 %v1827_v15  ;;  %v3086_v43 = vpop.f32.mrf.mxu0  ;;  %v1820_v15 = vsel %vm1724_vm6, %v1570_v31, %v1772_v21  ;;  %v1819_v36 = vsel %vm1723_vm8, %v1565_v9, %v1771_v14 }
 0x2e6   :  { %v1755_v29 = vmul.f32 0.2, %v1485_v12  ;;  %vm1707_vm9 = vcmp.gt.f32.partialorder %v1485_v12, 0.0  ;;  %v1818_v27 = vsel %vm1722_vm10, %v1560_v13, %v1770_v20 }
 0x2e7   :  { %v3092_v40 = vpop.f32.mrf.mxu0 }
 0x2e8   :  { %2160 = vmatpush3.xpose.msra.mxu1 %v1811_v30  ;;  %v1804_v30 = vsel %vm1708_vm7, %v1490_v5, %v1756_v11  ;;  %v1803_v46 = vsel %vm1707_vm9, %v1485_v12, %v1755_v29 }
 0x2e9   :  { %2161 = vmatprep.subr.mxu1 %v1826_v25  ;;  %v1754_v25 = vmul.f32 0.2, %v1480_v28 }
 0x2eb   :  { %v1802_v53 = vsel %vm1706_vm11, %v1480_v28, %v1754_v25 }
 0x2ec   :  { %2162 = vmatpush3.xpose.msra.mxu1 %v1810_v49 }
 0x2ed   :  { %2163 = vmatprep.subr.mxu1 %v1825_v52  ;;  %v3096_v2 = vpop.f32.mrf.mxu0  ;;  %v1470_v52 = vadd.f32 %v3007_v16, %v3050_v47 }
 0x2ef   :  { %v3102_v8 = vpop.f32.mrf.mxu0  ;;  %v1752_v56 = vmul.f32 0.2, %v1470_v52  ;;  %vm1704_vm15 = vcmp.gt.f32.partialorder %v1470_v52, 0.0 }
 0x2f0   :  { %2164 = vmatpush3.xpose.msra.mxu1 %v1809_v54  ;;  %v1545_v54 = vadd.f32 %v3050_v47, %v3031_v35 }
 0x2f1   :  { %2165 = vmatprep.subr.mxu1 %v1824_v57  ;;  %v1465_v57 = vadd.f32 %v3050_v47, %v3009_v32  ;;  %v1800_v35 = vsel %vm1704_vm15, %v1470_v52, %v1752_v56  ;;  %v1625_v56 = vadd.f32 %v3050_v47, %v3082_v55 }
 0x2f2   :  { %v1767_v16 = vmul.f32 0.2, %v1545_v54  ;;  %vm1719_vm0 = vcmp.gt.f32.partialorder %v1545_v54, 0.0 }
 0x2f3   :  { %v1751_v23 = vmul.f32 0.2, %v1465_v57  ;;  %vm1703_vm1 = vcmp.gt.f32.partialorder %v1465_v57, 0.0 }
 0x2f4   :  { %2166 = vmatpush3.xpose.msra.mxu1 %v1808_v60  ;;  %v1816_v60 = vsel %vm1720_vm14, %v1550_v17, %v1768_v18  ;;  %v1635_v18 = vadd.f32 %v3050_v47, %v3092_v40  ;;  %v1783_v40 = vmul.f32 0.2, %v1625_v56 }
 0x2f5   :  { %2167 = vmatprep.subr.mxu1 %v1823_v62  ;;  %v3106_v38 = vpop.f32.mrf.mxu0  ;;  %v1815_v62 = vsel %vm1719_vm0, %v1545_v54, %v1767_v16 }
 0x2f6   :  { %vm1737_vm15 = vcmp.gt.f32.partialorder %v1635_v18, 0.0 }
 0x2f7   :  { %v3112_v39 = vpop.f32.mrf.mxu0 }
 0x2f8   :  { %2168 = vmatpush3.xpose.msra.mxu1 %v1807_v1  ;;  %v1799_v1 = vsel %vm1703_vm1, %v1465_v57, %v1751_v23  ;;  %vm1735_vm1 = vcmp.gt.f32.partialorder %v1625_v56, 0.0 }
 0x2f9   :  { %2169 = vmatprep.subr.mxu1 %v1822_v41 }
 0x2fc   :  { %2170 = vmatpush3.xpose.msra.mxu1 %v1806_v7 }
 0x2fd   :  { %2171 = vmatprep.subr.mxu1 %v1821_v10  ;;  %v3116_v33 = vpop.f32.mrf.mxu0 }
 0x2ff   :  { %v3122_v49 = vpop.f32.mrf.mxu0 }
 0x300   :  { %2172 = vmatpush3.xpose.msra.mxu1 %v1805_v19  ;;  %v1665_v20 = vadd.f32 %v3050_v47, %v3122_v49  ;;  %v1650_v49 = vadd.f32 %v3096_v2, %v3050_v47 }
 0x301   :  { %2173 = vmatprep.subr.mxu1 %v1820_v15  ;;  %v1670_v15 = vadd.f32 %v3116_v33, %v3050_v47 }
 0x302   :  { %v1791_v25 = vmul.f32 0.2, %v1665_v20  ;;  %vm1743_vm9 = vcmp.gt.f32.partialorder %v1665_v20, 0.0  ;;  %vm1740_vm12 = vcmp.gt.f32.partialorder %v1650_v49, 0.0 }
 0x303   :  { %vm1744_vm8 = vcmp.gt.f32.partialorder %v1670_v15, 0.0 }
 0x304   :  { %2174 = vmatpush3.xpose.msra.mxu1 %v1804_v30  ;;  %v1792_v30 = vmul.f32 0.2, %v1670_v15  ;;  %v1839_v17 = vsel %vm1743_vm9, %v1665_v20, %v1791_v25 }
 0x305   :  { %2175 = vmatprep.subr.mxu1 %v1819_v36  ;;  %v2301_v37 = vpop.f32.mrf.mxu0  ;;  %v1660_v36 = vadd.f32 %v3106_v38, %v3050_v47 }
 0x306   :  { %v1680_v10 = vadd.f32 %v2301_v37, %v3050_v47  ;;  %v1840_v33 = vsel %vm1744_vm8, %v1670_v15, %v1792_v30  ;;  %v1645_v37 = vadd.f32 %v3050_v47, %v3102_v8  ;;  %v1630_v8 = vadd.f32 %v3076_v50, %v3050_v47 }
 0x307   :  { %v1674_v34 = vpop.f32.mrf.mxu0  ;;  %v1790_v45 = vmul.f32 0.2, %v1660_v36  ;;  %vm1742_vm10 = vcmp.gt.f32.partialorder %v1660_v36, 0.0  ;;  %v1831_v50 = vsel %vm1735_vm1, %v1625_v56, %v1783_v40 }
 0x308   :  { %2176 = vmatpush3.xpose.msra.mxu1 %v1803_v46  ;;  %v1794_v19 = vmul.f32 0.2, %v1680_v10  ;;  %v1675_v13 = vadd.f32 %v3050_v47, %v1674_v34  ;;  %vm1746_vm6 = vcmp.gt.f32.partialorder %v1680_v10, 0.0  ;;  %v1655_v46 = vadd.f32 %v3050_v47, %v3112_v39 }
 0x309   :  { %2177 = vmatprep.subr.mxu1 %v1818_v27  ;;  %v1838_v38 = vsel %vm1742_vm10, %v1660_v36, %v1790_v45  ;;  %v1788_v27 = vmul.f32 0.2, %v1650_v49  ;;  %v1640_v39 = vadd.f32 %v3086_v43, %v3050_v47  ;;  %v1787_v42 = vmul.f32 0.2, %v1645_v37 }
 0x30a   :  { %v1793_v28 = vmul.f32 0.2, %v1675_v13  ;;  %v1842_v29 = vsel %vm1746_vm6, %v1680_v10, %v1794_v19  ;;  %vm1745_vm7 = vcmp.gt.f32.partialorder %v1675_v13, 0.0  ;;  %v1789_v51 = vmul.f32 0.2, %v1655_v46 }
 0x30b   :  { %vm1741_vm11 = vcmp.gt.f32.partialorder %v1655_v46, 0.0  ;;  %v1836_v2 = vsel %vm1740_vm12, %v1650_v49, %v1788_v27  ;;  %vm1739_vm13 = vcmp.gt.f32.partialorder %v1645_v37, 0.0  ;;  %vm1738_vm14 = vcmp.gt.f32.partialorder %v1640_v39, 0.0 }
 0x30c   :  { %2178 = vmatpush3.xpose.msra.mxu1 %v1802_v53  ;;  %v1841_v44 = vsel %vm1745_vm7, %v1675_v13, %v1793_v28  ;;  %v1837_v52 = vsel %vm1741_vm11, %v1655_v46, %v1789_v51  ;;  %v1786_v53 = vmul.f32 0.2, %v1640_v39  ;;  %v1835_v54 = vsel %vm1739_vm13, %v1645_v37, %v1787_v42 }
 0x30d   :  { %2179 = vmatprep.subr.mxu1 %v1817_v22  ;;  %v2304_v59 = vpop.f32.mrf.mxu0  ;;  %v1785_v22 = vmul.f32 0.2, %v1635_v18  ;;  %v1784_v34 = vmul.f32 0.2, %v1630_v8  ;;  %vm1736_vm0 = vcmp.gt.f32.partialorder %v1630_v8, 0.0 }
 0x30e   :  { %v1690_v41 = vadd.f32 %v2304_v59, %v3050_v47  ;;  %v1834_v43 = vsel %vm1738_vm14, %v1640_v39, %v1786_v53 }
 0x30f   :  { %v1684_v61 = vpop.f32.mrf.mxu0  ;;  %v1833_v57 = vsel %vm1737_vm15, %v1635_v18, %v1785_v22 }
 0x310   :  { %2180 = vmatpush3.xpose.msra.mxu1 %v1801_v58  ;;  %v1796_v7 = vmul.f32 0.2, %v1690_v41  ;;  %v1685_v21 = vadd.f32 %v3050_v47, %v1684_v61  ;;  %vm1748_vm4 = vcmp.gt.f32.partialorder %v1690_v41, 0.0  ;;  %v1832_v58 = vsel %vm1736_vm0, %v1630_v8, %v1784_v34 }
 0x311   :  { %2181 = vmatprep.subr.mxu1 %v1816_v60 }
 0x312   :  { %v1795_v11 = vmul.f32 0.2, %v1685_v21  ;;  %v1844_v12 = vsel %vm1748_vm4, %v1690_v41, %v1796_v7  ;;  %vm1747_vm5 = vcmp.gt.f32.partialorder %v1685_v21, 0.0 }
 0x314   :  { %2182 = vmatpush3.xpose.msra.mxu1 %v1800_v35  ;;  %v1843_v14 = vsel %vm1747_vm5, %v1685_v21, %v1795_v11 }
 0x315   :  { %v2307_v63 = vpop.f32.mrf.mxu0  ;;  %2183 = vmatprep.subr.mxu1 %v1815_v62 }
 0x316   :  { %v1700_v0 = vadd.f32 %v2307_v63, %v3050_v47 }
 0x317   :  { %v1694_v32 = vpop.f32.mrf.mxu0 }
 0x318   :  { %vm1750_vm2 = vcmp.gt.f32.partialorder %v1700_v0, 0.0  ;;  %v1798_v31 = vmul.f32 0.2, %v1700_v0  ;;  %2184 = vmatpush3.xpose.msra.mxu1 %v1799_v1  ;;  %v1695_v4 = vadd.f32 %v3050_v47, %v1694_v32  ;;  %v1849_v47 = vstv %s3191_s8 }
 0x31a   :  { %v1797_v5 = vmul.f32 0.2, %v1695_v4  ;;  %v1846_v6 = vsel %vm1750_vm2, %v1700_v0, %v1798_v31  ;;  %vm1749_vm3 = vcmp.gt.f32.partialorder %v1695_v4, 0.0  ;;  %v2354_v31 = vmov 1966171168  }
 0x31b   :  { %2309 = vmatpush3.xpose.msra.mxu0 %v1846_v6  ;;  %2186 = vmatmul.mubr.f32.vlgmr.msra.gmra.mxu1 %v3055_v48  ;;  %vm2032_vm2 = vcmp.lt.s32.totalorder %v91_v24, 384 }
 0x31c   :  { %2310 = vmatprep.subr.mxu0 %v2352_v3  ;;  %v1845_v9 = vsel %vm1749_vm3, %v1695_v4, %v1797_v5  ;;  %v2008_v4 = vunpack.c.l.s4 %v2354_v31 }
 0x31e   :  { %v2009_v6 = vunpack.c.0.s8 %v2008_v4 }
 0x31f   :  { %2311 = vmatpush3.xpose.msra.mxu0 %v1845_v9 }
 0x320   :  { %2312 = vmatprep.subr.mxu0 %v2352_v3  ;;  %v2012_v9 = vsub.s32 %v2009_v6, %v2792_v26 }
 0x323   :  { %2313 = vmatpush3.xpose.msra.mxu0 %v1844_v12 }
 0x324   :  { %2314 = vmatprep.subr.mxu0 %v2352_v3 }
 0x327   :  { %2315 = vmatpush3.xpose.msra.mxu0 %v1843_v14 }
 0x328   :  { %2316 = vmatprep.subr.mxu0 %v2352_v3 }
 0x32b   :  { %2317 = vmatpush3.xpose.msra.mxu0 %v1842_v29 }
 0x32c   :  { %2318 = vmatprep.subr.mxu0 %v2352_v3 }
 0x32f   :  { %2319 = vmatpush3.xpose.msra.mxu0 %v1841_v44 }
 0x330   :  { %2320 = vmatprep.subr.mxu0 %v2352_v3 }
 0x333   :  { %2321 = vmatpush3.xpose.msra.mxu0 %v1840_v33 }
 0x334   :  { %2322 = vmatprep.subr.mxu0 %v2352_v3 }
 0x337   :  { %2323 = vmatpush3.xpose.msra.mxu0 %v1839_v17 }
 0x338   :  { %2324 = vmatprep.subr.mxu0 %v2352_v3 }
 0x33b   :  { %2325 = vmatpush3.xpose.msra.mxu0 %v1838_v38 }
 0x33c   :  { %2326 = vmatprep.subr.mxu0 %v2352_v3 }
 0x33f   :  { %2327 = vmatpush3.xpose.msra.mxu0 %v1837_v52 }
 0x340   :  { %2328 = vmatprep.subr.mxu0 %v2352_v3 }
 0x343   :  { %2329 = vmatpush3.xpose.msra.mxu0 %v1836_v2 }
 0x344   :  { %2330 = vmatprep.subr.mxu0 %v2352_v3 }
 0x347   :  { %2331 = vmatpush3.xpose.msra.mxu0 %v1835_v54 }
 0x348   :  { %2332 = vmatprep.subr.mxu0 %v2352_v3 }
 0x34b   :  { %2333 = vmatpush3.xpose.msra.mxu0 %v1834_v43 }
 0x34c   :  { %2334 = vmatprep.subr.mxu0 %v2352_v3 }
 0x34f   :  { %2335 = vmatpush3.xpose.msra.mxu0 %v1833_v57 }
 0x350   :  { %2336 = vmatprep.subr.mxu0 %v2352_v3 }
 0x353   :  { %2337 = vmatpush3.xpose.msra.mxu0 %v1832_v58 }
 0x354   :  { %2338 = vmatprep.subr.mxu0 %v2352_v3 }
 0x357   :  { %2339 = vmatpush3.xpose.msra.mxu0 %v1831_v50 }
 0x35a   :  { %2341 = vmatmul.mubr.f32.vlgmr.msra.gmra.mxu0 %v3055_v48 }
 0x3db   :  { %v1916_v59 = vpop.f32.mrf.mxu1 }
 0x3dc   :  { %v1917_v16 = vadd.f32 %v1916_v59, %v1849_v47 }
 0x3dd   :  { %v1918_v55 = vpop.f32.mrf.mxu1 }
 0x3de   :  { %v1919_v60 = vadd.f32 %v1918_v55, %v1849_v47  ;;  %v1991_v23 = vmul.f32 0.5, %v1917_v16 }
 0x3e0   :  { %v1992_v61 = vmul.f32 0.5, %v1919_v60  ;;  %2346 = vtanh.f32 %v1991_v23 }
 0x3e2   :  { %2348 = vtanh.f32 %v1992_v61 }
 0x3ed   :  { %v2347_v0 = vpop.eup %2346 }
 0x3ee   :  { %v1997_v48 = vadd.f32 1.0, %v2347_v0 }
 0x3ef   :  { %v2349_v1 = vpop.eup %2348 }
 0x3f0   :  { %v1998_v32 = vadd.f32 1.0, %v2349_v1  ;;  %v2000_v41 = vmul.f32 0.5, %v1997_v48 }
 0x3f2   :  { %v2001_v5 = vmul.f32 0.5, %v1998_v32 }
 0x3f4   :  { %v2006_v21 = vcombine.low %v2000_v41, %v2001_v5 }
 0x3f6   :  { %v2013_v12 = vrot.slane %v2006_v21, %v2012_v9 }
 0x41a   :  { %v1987_v35 = vpop.f32.mrf.mxu0 }
 0x41b   :  { %v1988_v62 = vadd.f32 %v1987_v35, %v1849_v47 }
 0x41c   :  { %v2342_v63 = vpop.f32.mrf.mxu0 }
 0x41d   :  { %v1993_v3 = vmul.f32 0.5, %v1988_v62 }
 0x41f   :  { %2350 = vtanh.f32 %v1993_v3 }
 0x42c   :  { %v2351_v7 = vpop.eup %2350 }
 0x42d   :  { %v1999_v10 = vadd.f32 1.0, %v2351_v7 }
 0x42f   :  { %v2002_v11 = vmul.f32 0.5, %v1999_v10 }
 0x431   :  { %v2020_v19 = vrot.slane %v2002_v11, %v2012_v9 }
 0x433   :  { %v2021_v13 = vcombine.low %v2013_v12, %v2020_v19 }
 0x435   :  { %v2028_v14 = vrot.slane %v2021_v13, %v2012_v9 }
 0x437   :  { %2034 = vst.msk [vmem:[%s3192_s9] sm:$0x7] %vm2032_vm2, %v2028_v14 }

</bundles_post_ra>
